<compile_context>
chip_gen: v6e
topology: v6e:2x2x1
jax: 0.10.0
libtpu: 0.0.40
codegen_flags: <defaults>
</compile_context>

<pallas_src>
import functools
import math

import jax
import jax.numpy as jnp
from jax.experimental import pallas as pl
from jax.experimental.pallas import tpu as pltpu

_LANE = 128                       # vreg lane width
_MIN_PALLAS_ELEMS = 4096          # below ~4 vreg tiles: plain JAX add (fuses into consumer)
_TARGET_TILE_BYTES = 2 << 20      # ~2 MiB x-block per grid step


def build_positional_encoding(d_model: int, max_len: int = 50) -> jnp.ndarray:
    """Deterministic sinusoidal table, identical to the PyTorch __init__ (f32 buffer)."""
    position = jnp.arange(0, max_len, dtype=jnp.float32)[:, None]             # (max_len, 1)
    div_term = jnp.exp(jnp.arange(0, d_model, 2, dtype=jnp.float32)
                       * (-math.log(10000.0) / d_model))                      # (ceil(d/2),)
    angles = position * div_term                                              # (max_len, ceil(d/2))
    pe = jnp.zeros((max_len, d_model), dtype=jnp.float32)
    pe = pe.at[:, 0::2].set(jnp.sin(angles))
    pe = pe.at[:, 1::2].set(jnp.cos(angles)[:, : d_model // 2])
    return pe


# ----------------------------------------------------------------------------- kernels
def _pe_compute_add_kernel(x_ref, rate_ref, posoff_ref, even_ref, o_ref, *, fold):
    """out = x + PE, with PE generated in-kernel.

    x_ref/o_ref: (tile_rows, width) where width = fold * d_model and each row holds
    `fold` consecutive sequence positions.  rate/posoff/even are (1, width) per-lane
    constants:
        rate[c]   = exp(-(dim - dim%2) * ln(10000)/d_model),  dim = c % d_model
        posoff[c] = c // d_model
        even[c]   = 1.0 if dim even (sin) else 0.0 (cos)
    """
    rows, width = x_ref.shape
    base_row = pl.program_id(0) * rows
    row = jax.lax.broadcasted_iota(jnp.int32, (rows, width), 0)
    pos = (base_row + row).astype(jnp.float32) * float(fold) + posoff_ref[...]
    ang = pos * rate_ref[...]
    ev = even_ref[...]
    pe = ev * jnp.sin(ang) + (1.0 - ev) * jnp.cos(ang)        # exact sin/cos select, pure VPU blend
    o_ref[...] = (x_ref[...].astype(jnp.float32) + pe).astype(o_ref.dtype)


def _pe_stream_add_kernel(x_ref, pe_ref, o_ref):
    """Fallback: stream the precomputed PE tile from HBM (3 streams)."""
    o_ref[...] = (x_ref[...].astype(jnp.float32)
                  + pe_ref[...].astype(jnp.float32)).astype(o_ref.dtype)


# ----------------------------------------------------------------------------- wrappers
def _pick_tile_rows(rows: int, width: int, itemsize: int) -> int:
    """Largest reasonable row tile (multiple of 8) with >=2 grid steps when possible."""
    if rows <= 8:
        return rows
    t = max(8, min(rows, _TARGET_TILE_BYTES // max(1, width * itemsize)))
    if t >= rows:
        t = -(-rows // 2)          # cdiv(rows, 2): keep 2 steps so "parallel" can use both v7x TCs
    t = -(-t // 8) * 8             # sublane-align (block 2nd-to-last dim must be mult of 8)
    return rows if t >= rows else t


def _pe_lane_constants(d_model: int, fold: int):
    width = fold * d_model
    col = jnp.arange(width, dtype=jnp.int32)
    dim = col % d_model
    rate = jnp.exp(-(dim - dim % 2).astype(jnp.float32) * (math.log(10000.0) / d_model))
    posoff = (col // d_model).astype(jnp.float32)
    even = (dim % 2 == 0).astype(jnp.float32)
    return rate[None, :], posoff[None, :], even[None, :]


def _run_pallas(kernel, operands, x2, tile_rows, n_const):
    rows, width = x2.shape
    grid = (pl.cdiv(rows, tile_rows),)
    x_spec = pl.BlockSpec((tile_rows, width), lambda i: (i, 0))
    const_spec = pl.BlockSpec((1, width), lambda i: (0, 0))      # resident across grid steps
    streamed_spec = pl.BlockSpec((tile_rows, width), lambda i: (i, 0))
    in_specs = [x_spec] + [const_spec if n_const else streamed_spec] * (len(operands) - 1)
    if n_const:
        in_specs = [x_spec] + [const_spec] * n_const
    return pl.pallas_call(
        kernel,
        out_shape=jax.ShapeDtypeStruct((rows, width), x2.dtype),
        grid_spec=pltpu.PrefetchScalarGridSpec(
            num_scalar_prefetch=0,
            grid=grid,
            in_specs=in_specs,
            out_specs=x_spec,
        ),
        compiler_params=pltpu.CompilerParams(
            dimension_semantics=("parallel",),      # independent row tiles -> megacore sharding
            vmem_limit_bytes=32 * 1024 * 1024,      # ~8 MiB actually used; headroom on all gens
        ),
        # NOTE: input_output_aliases={0: 0} could donate x's buffer in a real model; omitted
        # here so x stays usable for the reference check.
    )(*operands)


def positional_encoding_forward(x: jnp.ndarray, base_pe: jnp.ndarray) -> jnp.ndarray:
    """Forward of PositionalEncoding: x + base_pe[:seq_len].

    x:       (seq_len, d_model)
    base_pe: (max_len, d_model), max_len >= seq_len (the module's f32 buffer).
    Output dtype == x.dtype (the add itself is computed in f32).
    """
    seq_len, d_model = x.shape
    max_len, pe_d = base_pe.shape
    assert pe_d == d_model and max_len >= seq_len, "base_pe shape does not match x"

    if seq_len * d_model < _MIN_PALLAS_ELEMS:
        # Tiny input: a standalone pallas_call is pure launch/DMA-setup overhead; let XLA
        # fuse the add into the consumer.
        return (x.astype(jnp.float32) + base_pe[:seq_len]).astype(x.dtype)

    # Lane-dense folding: pack `fold` consecutive positions per row so the last (lane)
    # dim is a multiple of 128 -> full-width stores.  The reshape is a free row-major
    # regrouping; skip folding (natural layout, still correct) if it would need padding.
    fold = _LANE // math.gcd(d_model, _LANE)
    if fold > 1 and seq_len % fold != 0:
        fold = 1
    width = fold * d_model
    rows = seq_len // fold
    tile_rows = _pick_tile_rows(rows, width, x.dtype.itemsize)
    x2 = x.reshape(rows, width)

    try:
        # Preferred path: PE computed in-kernel -> only 2 HBM streams.
        rate, posoff, even = _pe_lane_constants(d_model, fold)
        kernel = functools.partial(_pe_compute_add_kernel, fold=fold)
        out = _run_pallas(kernel, (x2, rate, posoff, even), x2, tile_rows, n_const=3)
    except Exception:
        # TODO(synk): drop this fallback once in-kernel sin/cos lowering is guaranteed on
        # all Mosaic toolchains; it streams the precomputed table instead (3 HBM streams,
        # cast done in-kernel so no wrapper-side materialization when x is bf16).
        pe2 = base_pe[:seq_len].reshape(rows, width)
        out = _run_pallas(_pe_stream_add_kernel, (x2, pe2), x2, tile_rows, n_const=0)

    return out.reshape(seq_len, d_model)


# ----------------------------------------------------------------------------- test
if __name__ == "__main__":
    key = jax.random.PRNGKey(0)
    k0, k1, k2 = jax.random.split(key, 3)

    # 1) Module's toy shape (seq=8, d_model=32): size-gated plain-JAX fast path.
    d_model, max_len, seq_len = 32, 50, 8
    base_pe = build_positional_encoding(d_model, max_len)
    x = jax.random.normal(k0, (seq_len, d_model), dtype=jnp.float32)
    out = positional_encoding_forward(x, base_pe)
    jax.block_until_ready(out)
    ref = x + base_pe[:seq_len]
    assert out.shape == x.shape and out.dtype == x.dtype
    assert jnp.allclose(out, ref, atol=1e-5), "toy-shape mismatch vs reference"

    # 2) Larger shape exercising the Pallas kernel, natural lane-dense layout (d_model >= 128).
    d2, m2, s2 = 256, 50, 48
    pe_tbl2 = build_positional_encoding(d2, m2)
    x2 = jax.random.normal(k1, (s2, d2), dtype=jnp.float32)
    out2 = positional_encoding_forward(x2, pe_tbl2)
    jax.block_until_ready(out2)
    ref2 = x2 + pe_tbl2[:s2]
    assert jnp.allclose(out2, ref2, atol=1e-5), "pallas (natural layout) mismatch vs reference"

    # 3) Narrow-feature shape exercising the fold path (fold=4 -> 128-lane rows, in-kernel PE).
    d3, m3, s3 = 32, 160, 160
    pe_tbl3 = build_positional_encoding(d3, m3)
    x3 = jax.random.normal(k2, (s3, d3), dtype=jnp.float32)
    out3 = positional_encoding_forward(x3, pe_tbl3)
    jax.block_until_ready(out3)
    ref3 = x3 + pe_tbl3[:s3]
    assert jnp.allclose(out3, ref3, atol=1e-5), "pallas (folded layout) mismatch vs reference"

    print("KERNEL_OK")
</pallas_src>

<mosaic_0001>
module attributes {stable_mosaic.version = 11 : i64} {
  func.func @_pe_compute_add_kernel(%arg0: i32, %arg1: memref<24x256xf32, #tpu.memory_space<vmem>>, %arg2: memref<1x256xf32, #tpu.memory_space<vmem>>, %arg3: memref<1x256xf32, #tpu.memory_space<vmem>>, %arg4: memref<1x256xf32, #tpu.memory_space<vmem>>, %arg5: memref<24x256xf32, #tpu.memory_space<vmem>>) attributes {dimension_semantics = [#tpu.dimension_semantics<parallel>], iteration_bounds = array<i64: 2>, scalar_prefetch = 0 : i64, scratch_operands = 0 : i64, tpu.core_type = #tpu.core_type<tc>, window_params = [{transform_indices = @transform_0, window_bounds = array<i64: 24, 256>}, {pipeline_mode = #tpu.pipeline_mode<synchronous>, transform_indices = @transform_1, window_bounds = array<i64: 1, 256>}, {pipeline_mode = #tpu.pipeline_mode<synchronous>, transform_indices = @transform_2, window_bounds = array<i64: 1, 256>}, {pipeline_mode = #tpu.pipeline_mode<synchronous>, transform_indices = @transform_3, window_bounds = array<i64: 1, 256>}, {transform_indices = @transform_4, window_bounds = array<i64: 24, 256>}]} {
    %c24_i32 = arith.constant 24 : i32
    %0 = arith.muli %arg0, %c24_i32 : i32
    %1 = tpu.iota {dimensions = array<i32: 0>} : vector<24x256xi32>
    %2 = vector.broadcast %0 : i32 to vector<24x256xi32>
    %3 = arith.addi %2, %1 : vector<24x256xi32>
    %4 = arith.sitofp %3 : vector<24x256xi32> to vector<24x256xf32>
    %cst = arith.constant 1.000000e+00 : f32
    %5 = vector.broadcast %cst : f32 to vector<24x256xf32>
    %6 = arith.mulf %4, %5 : vector<24x256xf32>
    %c0 = arith.constant 0 : index
    %c0_0 = arith.constant 0 : index
    %7 = vector.load %arg3[%c0, %c0_0] : memref<1x256xf32, #tpu.memory_space<vmem>>, vector<1x256xf32>
    %8 = vector.broadcast %7 : vector<1x256xf32> to vector<24x256xf32>
    %9 = arith.addf %6, %8 : vector<24x256xf32>
    %c0_1 = arith.constant 0 : index
    %c0_2 = arith.constant 0 : index
    %10 = vector.load %arg2[%c0_1, %c0_2] : memref<1x256xf32, #tpu.memory_space<vmem>>, vector<1x256xf32>
    %11 = vector.broadcast %10 : vector<1x256xf32> to vector<24x256xf32>
    %12 = arith.mulf %9, %11 : vector<24x256xf32>
    %c0_3 = arith.constant 0 : index
    %c0_4 = arith.constant 0 : index
    %13 = vector.load %arg4[%c0_3, %c0_4] : memref<1x256xf32, #tpu.memory_space<vmem>>, vector<1x256xf32>
    %14 = math.sin %12 : vector<24x256xf32>
    %15 = vector.broadcast %13 : vector<1x256xf32> to vector<24x256xf32>
    %16 = arith.mulf %15, %14 : vector<24x256xf32>
    %cst_5 = arith.constant 1.000000e+00 : f32
    %17 = vector.broadcast %cst_5 : f32 to vector<1x256xf32>
    %18 = arith.subf %17, %13 : vector<1x256xf32>
    %19 = math.cos %12 : vector<24x256xf32>
    %20 = vector.broadcast %18 : vector<1x256xf32> to vector<24x256xf32>
    %21 = arith.mulf %20, %19 : vector<24x256xf32>
    %22 = arith.addf %16, %21 : vector<24x256xf32>
    %c0_6 = arith.constant 0 : index
    %c0_7 = arith.constant 0 : index
    %23 = vector.load %arg1[%c0_6, %c0_7] : memref<24x256xf32, #tpu.memory_space<vmem>>, vector<24x256xf32>
    %24 = arith.addf %23, %22 : vector<24x256xf32>
    %c0_8 = arith.constant 0 : index
    %c0_9 = arith.constant 0 : index
    %25 = vector.load %arg5[%c0_8, %c0_9] : memref<24x256xf32, #tpu.memory_space<vmem>>, vector<24x256xf32>
    tpu.vector_store %arg5[%c0_8, %c0_9], %24 {strides = array<i32>} : memref<24x256xf32, #tpu.memory_space<vmem>>, vector<24x256xf32>,
    return
  }
  func.func @transform_0(%arg0: i32) -> (i32, i32) {
    %c0_i32 = arith.constant 0 : i32
    %c0_i32_0 = arith.constant 0 : i32
    return %arg0, %c0_i32 : i32, i32
  }
  func.func @transform_1(%arg0: i32) -> (i32, i32) {
    %c0_i32 = arith.constant 0 : i32
    %c0_i32_0 = arith.constant 0 : i32
    %c0_i32_1 = arith.constant 0 : i32
    return %c0_i32, %c0_i32_0 : i32, i32
  }
  func.func @transform_2(%arg0: i32) -> (i32, i32) {
    %c0_i32 = arith.constant 0 : i32
    %c0_i32_0 = arith.constant 0 : i32
    %c0_i32_1 = arith.constant 0 : i32
    return %c0_i32, %c0_i32_0 : i32, i32
  }
  func.func @transform_3(%arg0: i32) -> (i32, i32) {
    %c0_i32 = arith.constant 0 : i32
    %c0_i32_0 = arith.constant 0 : i32
    %c0_i32_1 = arith.constant 0 : i32
    return %c0_i32, %c0_i32_0 : i32, i32
  }
  func.func @transform_4(%arg0: i32) -> (i32, i32) {
    %c0_i32 = arith.constant 0 : i32
    %c0_i32_0 = arith.constant 0 : i32
    return %arg0, %c0_i32 : i32, i32
  }
}

module attributes {stable_mosaic.version = 11 : i64} {
  func.func @_pe_stream_add_kernel(%arg0: i32, %arg1: memref<24x256xf32, #tpu.memory_space<vmem>>, %arg2: memref<24x256xf32, #tpu.memory_space<vmem>>, %arg3: memref<24x256xf32, #tpu.memory_space<vmem>>) attributes {dimension_semantics = [#tpu.dimension_semantics<parallel>], iteration_bounds = array<i64: 2>, scalar_prefetch = 0 : i64, scratch_operands = 0 : i64, tpu.core_type = #tpu.core_type<tc>, window_params = [{transform_indices = @transform_0, window_bounds = array<i64: 24, 256>}, {transform_indices = @transform_1, window_bounds = array<i64: 24, 256>}, {transform_indices = @transform_2, window_bounds = array<i64: 24, 256>}]} {
    %c0 = arith.constant 0 : index
    %c0_0 = arith.constant 0 : index
    %0 = vector.load %arg1[%c0, %c0_0] : memref<24x256xf32, #tpu.memory_space<vmem>>, vector<24x256xf32>
    %c0_1 = arith.constant 0 : index
    %c0_2 = arith.constant 0 : index
    %1 = vector.load %arg2[%c0_1, %c0_2] : memref<24x256xf32, #tpu.memory_space<vmem>>, vector<24x256xf32>
    %2 = arith.addf %0, %1 : vector<24x256xf32>
    %c0_3 = arith.constant 0 : index
    %c0_4 = arith.constant 0 : index
    %3 = vector.load %arg3[%c0_3, %c0_4] : memref<24x256xf32, #tpu.memory_space<vmem>>, vector<24x256xf32>
    tpu.vector_store %arg3[%c0_3, %c0_4], %2 {strides = array<i32>} : memref<24x256xf32, #tpu.memory_space<vmem>>, vector<24x256xf32>,
    return
  }
  func.func @transform_0(%arg0: i32) -> (i32, i32) {
    %c0_i32 = arith.constant 0 : i32
    %c0_i32_0 = arith.constant 0 : i32
    return %arg0, %c0_i32 : i32, i32
  }
  func.func @transform_1(%arg0: i32) -> (i32, i32) {
    %c0_i32 = arith.constant 0 : i32
    %c0_i32_0 = arith.constant 0 : i32
    return %arg0, %c0_i32 : i32, i32
  }
  func.func @transform_2(%arg0: i32) -> (i32, i32) {
    %c0_i32 = arith.constant 0 : i32
    %c0_i32_0 = arith.constant 0 : i32
    return %arg0, %c0_i32 : i32, i32
  }
}

</mosaic_0001>

<bundles_post_ra>
// kernel: tpu_custom_call.1
= control target key start
LH: loop header
LB: loop body
LE: loop exit
PB: predicated region body
PF: predicated region fallthrough
CT: control target
= control target key end

     0   :  { %9 = vsyncpa [#allocation3], 0  ;;  %s2901_s0 = inlined_call_operand.hbm [shape: f32[48,256], index: 0, kind: input, shape index: {}]   ;;  %s2902_s1 = inlined_call_operand.hbm [shape: f32[1,256], index: 1, kind: input, shape index: {}]   ;;  %s2903_s2 = inlined_call_operand.vmem [shape: f32[1,256], index: 2, kind: input, shape index: {}]   ;;  %s2904_s3 = inlined_call_operand.vmem [shape: f32[1,256], index: 3, kind: input, shape index: {}]   ;;  %s2905_s4 = inlined_call_operand.hbm [shape: f32[48,256], index: 4, kind: output, shape index: {}]  }
   0x1   :  { %11 = vsyncpa [#allocation3 + $0x1], 0 }
   0x2   :  { %12 = vsyncpa [#allocation6], 0 }
   0x3   :  { %13 = vsyncpa [#allocation4], 0 }
   0x4   :  { %15 = vsyncpa [#allocation4 + $0x1], 0  ;;  %s2025_s15 = smov 0   ;;  %s2027_s16 = smov 0  }
   0x5   :  { %s2029_s17 = smov 0   ;;  %s2031_s18 = smov 0  }
   0x6 LB: > { %s2046_s19 = sadd.s32 4294967295, %s1985_s18   ;;  %s1680_s20 = sadd.s32 4294967294, %s1985_s18   ;;  %s1985_s18 = sphi %s2031_s18, %s2938_s18   ;;  %s1981_s17 = sphi %s2029_s17, %s2937_s17   ;;  %s1977_s16 = sphi %s2027_s16, %s2936_s16   ;;  %s1973_s15 = sphi %s2025_s15, %s2935_s15  }
   0x7   : > { %s2050_s21 = sadd.s32 1, %s1985_s18   ;;  %s28_s22 = sadd.s32 1, %s1981_s17 }
   0x8   : > { %s25_s23 = ssub.s32 %s1985_s18, %s2050_s21  ;;  %p35_p0 = scmp.ne.s32.totalorder %s1981_s17, %s1977_s16 }
   0x9   : > { %p26_p1 = scmp.eq.s32.totalorder %s25_s23, 0  ;;  %p36_p2 = scmp.eq.s32.totalorder %s1985_s18, 0 }
   0xa   : > { %p41_p3 = scmp.ne.s32.totalorder %s1977_s16, %s1973_s15  ;;  %p2906_p4 = scmp.eq.s32.totalorder %s2046_s19, 0 }
   0xb   : > { %s2062_s24 = scalar_select %p26_p1, %s1981_s17, %s28_s22  }
   0xc   : > { %p2064_p5 = por %p36_p2, %p35_p0  ;;  %p2070_p6 = por %p2906_p4, %p41_p3 }
   0xd   : > { %p128_p7 = scmp.eq.s32.totalorder %s2046_s19, 1  ;;  %p134_p8 = scmp.eq.s32.totalorder %s1680_s20, 1 }
   0xe   : > { %s2911_s26 = scalar_select %p2070_p6, 1, 0 }
   0xf   : > { %p1681_p9 = scmp.ge.s32.totalorder %s1985_s18, 1  ;;  %p141_p10 = scmp.lt.s32.totalorder %s1985_s18, 3 }
  0x10   : > { %p2077_p11 = por %p128_p7, %p35_p0  ;;  %p2081_p12 = por %p134_p8, %p41_p3 }
  0x11   : > { %p2085_p13 = pnand %p1681_p9, %p141_p10  ;;  %s1987_s30 = smov [#allocation5]  }
  0x12   : > { %s2912_s27 = scalar_select %p2077_p11, 1, 0 }
  0x13   : > { %s2913_s28 = scalar_select %p2081_p12, 1, 0 }
  0x14   : > { %s2914_s29 = scalar_select %p2085_p13, 1, 0 }
  0x15   : > { %p1780_p2 = pneg %p2085_p13  ;;  %s154_s5 = sshll.u32 %s1987_s30, 4  ;;  %s155_s5 = int_to_ptr.vmem [resolvable:$true] %s154_s5 }
  0x16   : > { %p1793_p4 = scmp.lt.s32.totalorder %s1985_s18, 2  ;;  %p2915_p0 = scmp.eq.s32.totalorder %s2046_s19, 0 }
  0x17   : > { %s171_s7 = sand.u32 1, %s1981_s17   ;;  %s1874_s10 = scalar_lea.vmem %s155_s5, 32 }
  0x18   : > { %p2095_p7 = pnand %p1780_p2, %p2915_p0  ;;  %p2102_p3 = pnand %p1793_p4, %p2064_p5 }
  0x19   : > { %s1746_s9 = smul.u32 48, %s171_s7  ;;  %p1875_p9 = scmp.ne.s32.totalorder %s155_s5, %s1874_s10 }
  0x1a   : > { %p1865_p8 = pneg %p2095_p7  ;;  %p1882_p12 = scmp.lt.s32.totalorder %s155_s5, %s155_s5 }
  0x1b   : > { %p1883_p11 = scmp.lt.s32.totalorder %s1874_s10, %s1874_s10 }
  0x1c   : > { %p1877_p10 = pnand %p1875_p9, %p1865_p8 }
  0x1d   : > { %p1884_p2 = por %p1883_p11, %p1882_p12 }
  0x1e   : > { %p1878_p1 = pneg %p1877_p10 }
  0x20   : > { %p1885_p0 = pnand %p1884_p2, %p1878_p1 }
  0x22   : > { %1888 = shalt.err (!%p1885_p0)
}
  0x23   : > { %1783 = dma.hbm_to_vmem [thread:$0]  (!%p2095_p7), %s2902_s1, 32, %s155_s5, [#allocation6]  }
  0x24   : > { %s1744_s13 = smul.u32 768, %s1985_s18  ;;  %s175_s14 = scalar_lea.vmem [#allocation2], %s1746_s9 }
  0x25   : > { %s183_s20 = sshll.u32 %s175_s14, 4  ;;  %s2121_s30 = scalar_lea.sflag [#allocation3], %s171_s7  ;;  %s2114_s20 = int_to_ptr.vmem [resolvable:$true] %s183_s20 }
  0x26   : > { %s2119_s25 = scalar_lea.hbm %s2901_s0, %s1744_s13  ;;  %p1891_p5 = pneg %p2102_p3 }
  0x27   : > { %s1889_s6 = scalar_lea.hbm %s2119_s25, 768  ;;  %s1894_s10 = scalar_lea.hbm %s2901_s0, 1536 }
  0x28   : > { %p1890_p4 = scmp.ne.s32.totalorder %s2119_s25, %s1889_s6  ;;  %p1895_p1 = scmp.lt.s32.totalorder %s2119_s25, %s2901_s0 }
  0x29   : > { %p1896_p7 = scmp.lt.s32.totalorder %s1894_s10, %s1889_s6 }
  0x2a   : > { %p1892_p11 = pnand %p1891_p5, %p1890_p4 }
  0x2b   : > { %p1897_p8 = por %p1896_p7, %p1895_p1 }
  0x2c   : > { %p1893_p12 = pneg %p1892_p11 }
  0x2e   : > { %p1898_p9 = pnand %p1897_p8, %p1893_p12 }
  0x30   : > { %1901 = shalt.err (!%p1898_p9)
}
  0x31   : > { %s1902_s7 = scalar_lea.vmem %s2114_s20, 768  ;;  %s1988_s13 = smov [#allocation2]  }
  0x32   : > { %p1903_p10 = scmp.ne.s32.totalorder %s2114_s20, %s1902_s7  ;;  %s1907_s14 = sshll.u32 %s1988_s13, 4  ;;  %s1908_s14 = int_to_ptr.vmem [resolvable:$false] %s1907_s14 }
  0x33   : > { %s1909_s22 = scalar_lea.vmem %s1908_s14, 1536  ;;  %p1910_p4 = scmp.lt.s32.totalorder %s2114_s20, %s1908_s14 }
  0x34   : > { %p1905_p2 = pnand %p1903_p10, %p1891_p5  ;;  %p1911_p11 = scmp.lt.s32.totalorder %s1909_s22, %s1902_s7 }
  0x36   : > { %p1906_p0 = pneg %p1905_p2  ;;  %p1912_p6 = por %p1911_p11, %p1910_p4 }
  0x38   : > { %p1913_p13 = pnand %p1912_p6, %p1906_p0 }
  0x3a   : > { %1916 = shalt.err (!%p1913_p13)
}
  0x3b   : > { %s1989_s23 = smov 256   ;;  %s1990_s6 = smov 16  }
  0x3c   : > { %1787 = dma.hbm_to_vmem [thread:$0]  (!%p2102_p3), %s2119_s25, 768, %s2114_s20, %s2121_s30, %s1989_s23, %s1989_s23, %s1990_s6  }
  0x3d   : > { %p2918_p5 = scmp.ne.s32.totalorder %s2914_s29, 0 }
  0x3e   : > { %s2145_s5 = sand.u32 (!%p2918_p5), 1, %s1977_s16   ;;  %p2919_p6 = scmp.ne.s32.totalorder (!%p2918_p5), %s2911_s26, 0 }
  0x3f   : > { %195 = sbr.rel (%p2918_p5) target bundleno = 296 (0x128), region = 36  ;;  %s198_s10 = scalar_lea.sflag (!%p2918_p5), [#allocation3], %s2145_s5 }
  0x40   : > { %s1747_s9 = smul.u32 (!%p2918_p5), 48, %s2145_s5 }
  0x42   : > { %s2151_s11 = scalar_lea.vmem (!%p2918_p5), [#allocation2], %s1747_s9 }
  0x44   : > { %1960 = dma.done.wait (%p2919_p6), %s198_s10, 768  }
  0x45   : > { %1962 = vsyncadd (%p2919_p6), %s198_s10, 4294966528  ;;  %p2920_p13 = scmp.eq.s32.totalorder %s2046_s19, 0 }
  0x47   : > { %1964 = dma.done.wait (%p2920_p13), [#allocation6], 32   ;;  %p2921_p3 = pmov %p2920_p13 }
  0x48   : > { %s232_s29 = smul.u32 24, %s2046_s19  ;;  %v233_v0 = vlaneseq  ;;  %v244_v9 = vld [vmem:[%s2903_s2] sm:$0x3]  ;;  %v1991_v50 = vmov 683565275   ;;  %s2829_s30 = scalar_lea.vmem [#allocation7], %s1747_s9 }
  0x49   : > { %1966 = vsyncadd (%p2921_p3), [#allocation6], 4294967264  ;;  %v262_v10 = vld [vmem:[#allocation5] sm:$0x3]  ;;  %v1992_v52 = vmov 2475754826  }
  0x4a   : > { %v2162_v1 = vshrl.u32 %v233_v0, 7  ;;  %v2164_v2 = vstv %s232_s29  ;;  %v1993_v54 = vmov 2131351028   ;;  %v1994_v56 = vmov 2102212464   ;;  %s1745_s12 = smul.u32 768, %s2046_s19 }
  0x4b   : > { %v1995_v58 = vmov 920167782   ;;  %s1597_s7 = sshll.u32 %s2829_s30, 4  ;;  %s1583_s19 = scalar_lea.sflag [#allocation4], %s2145_s5  ;;  %s2857_s7 = int_to_ptr.vmem [resolvable:$true] %s1597_s7 }
  0x4c   : > { %v235_v3 = vadd.s32 8, %v2162_v1  ;;  %v238_v4 = vadd.s32 %v2164_v2, %v2162_v1  ;;  %v2170_v5 = vsub.s32 0, %v2162_v1  ;;  %v2173_v6 = vsub.s32 1, %v2162_v1  ;;  %s2855_s22 = scalar_lea.hbm %s2905_s4, %s1745_s12  ;;  %s1917_s23 = scalar_lea.vmem %s2857_s7, 768 }
  0x4d   : > { %p1918_p12 = scmp.ne.s32.totalorder %s2857_s7, %s1917_s23  ;;  %p2932_p1 = scmp.ne.s32.totalorder %s2912_s27, 0 }
  0x4e   : > { %v239_v7 = vadd.s32 %v2164_v2, %v235_v3  ;;  %v241_v8 = vcvt.s32.f32 %v238_v4  ;;  %v2180_v12 = vrot.slane %v244_v9, %v2170_v5  ;;  %v2183_v13 = vrot.slane %v244_v9, %v2173_v6  ;;  %s1997_s6 = smov [#allocation7]  }
  0x4f   : > { %v2186_v14 = vrot.slane %v262_v10, %v2170_v5  ;;  %v2189_v15 = vrot.slane %v262_v10, %v2173_v6  ;;  %v1996_v4 = vmov 1326507024   ;;  %p1919_p7 = pnand %p1918_p12, %p2932_p1  ;;  %s1921_s9 = sshll.u32 %s1997_s6, 4  ;;  %s1922_s9 = int_to_ptr.vmem [resolvable:$false] %s1921_s9 }
  0x50   : > { %v242_v11 = vcvt.s32.f32 %v239_v7  ;;  %v256_v16 = vadd.f32 %v2180_v12, %v241_v8  ;;  %v257_v17 = vadd.f32 %v2183_v13, %v241_v8  ;;  %s1923_s10 = scalar_lea.vmem %s1922_s9, 1536  ;;  %p1924_p9 = scmp.lt.s32.totalorder %s2857_s7, %s1922_s9 }
  0x51   : > { %p1920_p8 = pneg %p1919_p7  ;;  %p1925_p10 = scmp.lt.s32.totalorder %s1923_s10, %s1917_s23 }
  0x52   : > { %v258_v18 = vadd.f32 %v2180_v12, %v242_v11  ;;  %v2195_v19 = vmul.f32 %v2186_v14, %v256_v16  ;;  %v2198_v20 = vmul.f32 %v2189_v15, %v257_v17  ;;  %v2213_v39 = vadd.f32 %v2183_v13, %v242_v11 }
  0x53   : > { %p1926_p2 = por %p1925_p10, %p1924_p9 }
  0x54   : > { %v2201_v21 = vmul.f32 %v2186_v14, %v258_v18  ;;  %v281_v22 = vand.u32 2147483647, %v2195_v19  ;;  %v284_v23 = vand.u32 2139095040, %v2195_v19  ;;  %v385_v24 = vand.u32 2147483647, %v2198_v20 }
  0x55   : > { %v388_v25 = vand.u32 2139095040, %v2198_v20  ;;  %p1927_p0 = pnand %p1926_p2, %p1920_p8 }
  0x56   : > { %v285_v26 = vshrl.u32 %v284_v23, 23  ;;  %v288_v27 = vand.u32 8388607, %v281_v22  ;;  %v392_v29 = vand.u32 8388607, %v385_v24  ;;  %v492_v30 = vand.u32 2139095040, %v2201_v21 }
  0x57   : > { %v389_v28 = vshrl.u32 %v388_v25, 23  ;;  %v489_v44 = vand.u32 2147483647, %v2201_v21 }
  0x58   : > { %v1688_v31 = vadd.s32 4294967169, %v285_v26  ;;  %v493_v33 = vshrl.u32 %v492_v30, 23  ;;  %v289_v35 = vor.u32 8388608, %v288_v27  ;;  %v393_v36 = vor.u32 8388608, %v392_v29 }
  0x59   : > { %v1692_v32 = vadd.s32 4294967169, %v389_v28 }
  0x5a   : > { %v291_v34 = vadd.s32 1, %v1688_v31  ;;  %v1696_v38 = vadd.s32 4294967169, %v493_v33  ;;  %v2216_v45 = vshll.u32 %v289_v35, 8  ;;  %v2218_v47 = vshll.u32 %v393_v36, 8 }
  0x5b   : > { %v395_v37 = vadd.s32 1, %v1692_v32 }
  0x5c   : > { %vm292_vm0 = vcmp.gt.s32.totalorder %v291_v34, 0  ;;  %v2220_v48 = vadd.s32 1, %v1696_v38 }
  0x5d   : > { %v293_v40 = vsel %vm292_vm0, %v291_v34, 0  ;;  %vm396_vm1 = vcmp.gt.s32.totalorder %v395_v37, 0 }
  0x5e   : > { %v294_v41 = vshrl.u32 %v293_v40, 5  ;;  %v295_v42 = vand.u32 31, %v293_v40  ;;  %v397_v43 = vsel %vm396_vm1, %v395_v37, 0  ;;  %vm500_vm6 = vcmp.gt.s32.totalorder %v2220_v48, 0 }
  0x5f   : > { %v399_v46 = vand.u32 31, %v397_v43  ;;  %v2227_v60 = vshrl.u32 %v397_v43, 5 }
  0x60   : > { %v296_v49 = vsub.s32 32, %v295_v42  ;;  %v298_v51 = vshll.u32 %v1991_v50, %v295_v42  ;;  %v301_v53 = vshll.u32 %v1992_v52, %v295_v42  ;;  %v304_v55 = vshll.u32 %v1993_v54, %v295_v42 }
  0x61   : > { %v307_v57 = vshll.u32 %v1994_v56, %v295_v42  ;;  %v310_v59 = vshll.u32 %v1995_v58, %v295_v42  ;;  %vm313_vm2 = vcmp.lt.s32.totalorder %v294_v41, 1  ;;  %vm314_vm3 = vcmp.lt.s32.totalorder %v294_v41, 2 }
  0x62   : > { %v297_v61 = vshrl.u32 %v1991_v50, %v296_v49  ;;  %v299_v62 = vshrl.u32 %v1992_v52, %v296_v49  ;;  %v302_v63 = vshrl.u32 %v1993_v54, %v296_v49  ;;  %v305_v0 = vshrl.u32 %v1994_v56, %v296_v49 }
  0x63   : > { %v308_v3 = vshrl.u32 %v1995_v58, %v296_v49  ;;  %v311_v7 = vshrl.u32 %v1996_v4, %v296_v49  ;;  %vm316_vm4 = vcmp.lt.s32.totalorder %v294_v41, 4  ;;  %v400_v11 = vsub.s32 32, %v399_v46 }
  0x64   : > { %v300_v8 = vor.u32 %v299_v62, %v298_v51  ;;  %v303_v9 = vor.u32 %v302_v63, %v301_v53  ;;  %v306_v10 = vor.u32 %v305_v0, %v304_v55  ;;  %vm315_vm5 = vcmp.lt.s32.totalorder %v294_v41, 3 }
  0x65   : > { %v309_v16 = vor.u32 %v308_v3, %v307_v57  ;;  %v312_v17 = vor.u32 %v311_v7, %v310_v59  ;;  %v402_v18 = vshll.u32 %v1991_v50, %v399_v46  ;;  %v405_v31 = vshll.u32 %v1992_v52, %v399_v46 }
  0x66   : > { %v317_v23 = vsel %vm313_vm2, %v297_v61, %v300_v8  ;;  %v318_v25 = vsel %vm316_vm4, %v306_v10, 2102212464  ;;  %v321_v26 = vsel %vm313_vm2, %v300_v8, %v303_v9  ;;  %v325_v27 = vsel %vm313_vm2, %v303_v9, %v306_v10 }
  0x67   : > { %v319_v28 = vsel %vm315_vm5, %v303_v9, %v318_v25  ;;  %v322_v29 = vsel %vm316_vm4, %v309_v16, 920167782  ;;  %v326_v30 = vsel %vm316_vm4, %v312_v17, 1326507024  ;;  %v401_v34 = vshrl.u32 %v1991_v50, %v400_v11 }
  0x68   : > { %v323_v32 = vsel %vm315_vm5, %v306_v10, %v322_v29  ;;  %v327_v33 = vsel %vm315_vm5, %v309_v16, %v326_v30  ;;  %v403_v35 = vshrl.u32 %v1992_v52, %v400_v11  ;;  %v320_v36 = vsel %vm314_vm3, %v317_v23, %v319_v28 }
  0x69   : > { %v324_v37 = vsel %vm314_vm3, %v321_v26, %v323_v32  ;;  %v328_v38 = vsel %vm314_vm3, %v325_v27, %v327_v33  ;;  %v406_v40 = vshrl.u32 %v1993_v54, %v400_v11  ;;  %v408_v57 = vshll.u32 %v1993_v54, %v399_v46 }
  0x6a   : > { %v2248_v42 = vmul.u32.u64.low %v2216_v45, %v328_v38  ;;  %v2249_v43 = vmul.u32.u64.high %v2216_v45, %v328_v38, %v2248_v42  ;;  %v2252_v49 = vmul.u32.u64.low %v2216_v45, %v324_v37  ;;  %v2253_v51 = vmul.u32.u64.high %v2216_v45, %v324_v37, %v2252_v49 }
  0x6b   : > { %v404_v53 = vor.u32 %v403_v35, %v402_v18  ;;  %v407_v55 = vor.u32 %v406_v40, %v405_v31  ;;  %v409_v59 = vshrl.u32 %v1994_v56, %v400_v11  ;;  %v411_v41 = vshll.u32 %v1994_v56, %v399_v46 }
  0x6c   : > { %v412_v61 = vshrl.u32 %v1995_v58, %v400_v11  ;;  %v414_v62 = vshll.u32 %v1995_v58, %v399_v46  ;;  %v415_v63 = vshrl.u32 %v1996_v4, %v400_v11  ;;  %v336_v0 = vmul.u32 %v2216_v45, %v320_v36 }
  0x6d   : > { %v410_v3 = vor.u32 %v409_v59, %v408_v57  ;;  %vm417_vm7 = vcmp.lt.s32.totalorder %v2227_v60, 1  ;;  %vm418_vm8 = vcmp.lt.s32.totalorder %v2227_v60, 2  ;;  %vm338_vm9 = vc.u32 %v2249_v43, %v2252_v49 }
  0x6e   : > { %v339_v7 = vadd.s32 1, %v2253_v51  ;;  %v413_v8 = vor.u32 %v412_v61, %v411_v41  ;;  %vm419_vm10 = vcmp.lt.s32.totalorder %v2227_v60, 3  ;;  %v416_v9 = vor.u32 %v415_v63, %v414_v62 }
  0x6f   : > { %vm420_vm11 = vcmp.lt.s32.totalorder %v2227_v60, 4  ;;  %v421_v46 = vsel %vm417_vm7, %v401_v34, %v404_v53  ;;  %v425_v10 = vsel %vm417_vm7, %v404_v53, %v407_v55  ;;  %v429_v17 = vsel %vm417_vm7, %v407_v55, %v410_v3 }
  0x70   : > { %v340_v45 = vsel %vm338_vm9, %v339_v7, %v2253_v51  ;;  %v422_v11 = vsel %vm420_vm11, %v410_v3, 2102212464  ;;  %v426_v16 = vsel %vm420_vm11, %v413_v8, 920167782  ;;  %v430_v26 = vsel %vm420_vm11, %v416_v9, 1326507024 }
  0x71   : > { %v341_v18 = vadd.s32 %v340_v45, %v336_v0  ;;  %v423_v23 = vsel %vm419_vm10, %v407_v55, %v422_v11  ;;  %v427_v25 = vsel %vm419_vm10, %v410_v3, %v426_v16  ;;  %v431_v29 = vsel %vm419_vm10, %v413_v8, %v430_v26 }
  0x72   : > { %v424_v27 = vsel %vm418_vm8, %v421_v46, %v423_v23  ;;  %v428_v28 = vsel %vm418_vm8, %v425_v10, %v427_v25  ;;  %v501_v30 = vsel %vm500_vm6, %v2220_v48, 0  ;;  %v432_v32 = vsel %vm418_vm8, %v429_v17, %v431_v29 }
  0x73   : > { %v342_v31 = vadd.s32 536870912, %v341_v18  ;;  %v2281_v33 = vmul.u32.u64.low %v2218_v47, %v428_v28  ;;  %v2282_v34 = vmul.u32.u64.high %v2218_v47, %v428_v28, %v2281_v33  ;;  %v496_v37 = vand.u32 8388607, %v489_v44 }
  0x74   : > { %v2286_v35 = vmul.u32.u64.low %v2218_v47, %v432_v32  ;;  %v2287_v36 = vmul.u32.u64.high %v2218_v47, %v432_v32, %v2286_v35  ;;  %v2293_v38 = vmul.f32 %v2189_v15, %v2213_v39  ;;  %v503_v60 = vand.u32 31, %v501_v30 }
  0x75   : > { %v2295_v48 = vshrl.u32 %v342_v31, 30  ;;  %v440_v40 = vmul.u32 %v2218_v47, %v424_v27  ;;  %v443_v51 = vadd.s32 1, %v2282_v34  ;;  %v236_v55 = vadd.s32 16, %v2162_v1 }
  0x76   : > { %v504_v53 = vsub.s32 32, %v503_v60  ;;  %vm442_vm12 = vc.u32 %v2287_v36, %v2281_v33  ;;  %v497_v57 = vor.u32 8388608, %v496_v37  ;;  %v502_v41 = vshrl.u32 %v501_v30, 5 }
  0x77   : > { %v344_v42 = vshll.u32 %v2295_v48, 30  ;;  %v444_v39 = vsel %vm442_vm12, %v443_v51, %v2282_v34  ;;  %v596_v61 = vand.u32 2139095040, %v2293_v38  ;;  %v506_v47 = vshll.u32 %v1991_v50, %v503_v60 }
  0x78   : > { %v445_v62 = vadd.s32 %v444_v39, %v440_v40  ;;  %v507_v63 = vshrl.u32 %v1992_v52, %v504_v53  ;;  %v509_v0 = vshll.u32 %v1992_v52, %v503_v60  ;;  %v510_v3 = vshrl.u32 %v1993_v54, %v504_v53 }
  0x79   : > { %v2303_v59 = vsub.s32 %v341_v18, %v344_v42  ;;  %v512_v7 = vshll.u32 %v1993_v54, %v503_v60  ;;  %v513_v8 = vshrl.u32 %v1994_v56, %v504_v53  ;;  %v2315_v9 = vadd.s32 %v2164_v2, %v236_v55 }
  0x7a   : > { %v446_v46 = vadd.s32 536870912, %v445_v62  ;;  %v515_v10 = vshll.u32 %v1994_v56, %v503_v60  ;;  %v2318_v45 = vshll.u32 %v497_v57, 8  ;;  %v516_v16 = vshrl.u32 %v1995_v58, %v504_v53 }
  0x7b   : > { %v347_v1 = vsub.s32 0, %v2303_v59  ;;  %vm524_vm13 = vcmp.lt.s32.totalorder %v502_v41, 4  ;;  %v597_v17 = vshrl.u32 %v596_v61, 23  ;;  %v505_v23 = vshrl.u32 %v1991_v50, %v504_v53 }
  0x7c   : > { %v2322_v18 = vshrl.u32 %v446_v46, 30  ;;  %v518_v25 = vshll.u32 %v1995_v58, %v503_v60  ;;  %v519_v2 = vshrl.u32 %v1996_v4, %v504_v53  ;;  %v508_v27 = vor.u32 %v507_v63, %v506_v47 }
  0x7d   : > { %v1689_v11 = vmin.u32 %v347_v1, %v2303_v59  ;;  %v511_v28 = vor.u32 %v510_v3, %v509_v0  ;;  %v514_v29 = vor.u32 %v513_v8, %v512_v7  ;;  %v517_v31 = vor.u32 %v516_v16, %v515_v10 }
  0x7e   : > { %v448_v30 = vshll.u32 %v2322_v18, 30  ;;  %vm521_vm14 = vcmp.lt.s32.totalorder %v502_v41, 1  ;;  %vm523_vm15 = vcmp.lt.s32.totalorder %v502_v41, 3  ;;  %v337_v32 = vadd.s32 %v2252_v49, %v2249_v43 }
  0x7f   : > { %v349_v26 = vclz %v1689_v11  ;;  %v520_v35 = vor.u32 %v519_v2, %v518_v25  ;;  %v526_v37 = vsel %vm524_vm13, %v514_v29, 2102212464  ;;  %vm522_vm0 = vcmp.lt.s32.totalorder %v502_v41, 2 }
  0x80   : > { %v2331_v40 = vsub.s32 %v445_v62, %v448_v30  ;;  %v530_v60 = vsel %vm524_vm13, %v517_v31, 920167782  ;;  %v1700_v42 = vadd.s32 4294967169, %v597_v17  ;;  %v525_v51 = vsel %vm521_vm14, %v505_v23, %v508_v27 }
  0x81   : > { %v1690_v34 = vadd.s32 4294967294, %v349_v26  ;;  %v529_v53 = vsel %vm521_vm14, %v508_v27, %v511_v28  ;;  %v531_v55 = vsel %vm523_vm15, %v514_v29, %v530_v60  ;;  %v527_v49 = vsel %vm523_vm15, %v511_v28, %v526_v37 }
  0x82   : > { %v451_v43 = vsub.s32 0, %v2331_v40  ;;  %v533_v39 = vsel %vm521_vm14, %v511_v28, %v514_v29  ;;  %v534_v63 = vsel %vm524_vm13, %v520_v35, 1326507024  ;;  %v243_v0 = vcvt.s32.f32 %v2315_v9 }
  0x83   : > { %vm1691_vm1 = vcmp.lt.s32.totalorder %v1690_v34, 0  ;;  %v532_v3 = vsel %vm522_vm0, %v529_v53, %v531_v55  ;;  %v535_v7 = vsel %vm523_vm15, %v517_v31, %v534_v63  ;;  %v603_v11 = vadd.s32 1, %v1700_v42 }
  0x84   : > { %v352_v57 = vsel %vm1691_vm1, 0, %v1690_v34  ;;  %v1693_v1 = vmin.u32 %v451_v43, %v2331_v40  ;;  %v536_v10 = vsel %vm522_vm0, %v533_v39, %v535_v7  ;;  %v528_v17 = vsel %vm522_vm0, %v525_v51, %v527_v49 }
  0x85   : > { %v353_v61 = vsub.s32 32, %v352_v57  ;;  %v354_v62 = vshll.u32 %v2303_v59, %v352_v57  ;;  %v357_v47 = vsub.s32 4294967266, %v352_v57  ;;  %v593_v59 = vand.u32 2147483647, %v2293_v38 }
  0x86   : > { %v453_v16 = vclz %v1693_v1  ;;  %v2350_v2 = vmul.u32.u64.low %v2318_v45, %v536_v10  ;;  %v2351_v26 = vmul.u32.u64.high %v2318_v45, %v536_v10, %v2350_v2  ;;  %vm604_vm2 = vcmp.gt.s32.totalorder %v603_v11, 0 }
  0x87   : > { %v355_v8 = vshrl.u32 %v337_v32, %v353_v61  ;;  %v358_v46 = vadd.s32 127, %v357_v47  ;;  %v2354_v28 = vmul.u32.u64.low %v2318_v45, %v532_v3  ;;  %v2355_v29 = vmul.u32.u64.high %v2318_v45, %v532_v3, %v2354_v28 }
  0x88   : > { %v1694_v27 = vadd.s32 4294967294, %v453_v16  ;;  %v260_v41 = vadd.f32 %v2180_v12, %v243_v0  ;;  %v605_v31 = vsel %vm604_vm2, %v603_v11, 0  ;;  %v544_v32 = vmul.u32 %v2318_v45, %v528_v17 }
  0x89   : > { %v356_v23 = vor.u32 %v355_v8, %v354_v62  ;;  %v359_v25 = vshll.u32 %v358_v46, 23  ;;  %v600_v34 = vand.u32 8388607, %v593_v59  ;;  %v607_v35 = vand.u32 31, %v605_v31 }
  0x8a   : > { %vm1695_vm3 = vcmp.lt.s32.totalorder %v1694_v27, 0  ;;  %vm546_vm4 = vc.u32 %v2351_v26, %v2354_v28  ;;  %v547_v53 = vadd.s32 1, %v2355_v29  ;;  %v2368_v12 = vmul.f32 %v2186_v14, %v260_v41 }
  0x8b   : > { %v360_v30 = vor.u32 4788187, %v359_v25  ;;  %v363_v60 = vcvt.s32.f32 %v356_v23  ;;  %v456_v42 = vsel %vm1695_vm3, 0, %v1694_v27  ;;  %v608_v55 = vsub.s32 32, %v607_v35 }
  0x8c   : > { %v461_v51 = vsub.s32 4294967266, %v456_v42  ;;  %v441_v45 = vadd.s32 %v2281_v33, %v2287_v36  ;;  %v457_v57 = vsub.s32 32, %v456_v42  ;;  %v548_v49 = vsel %vm546_vm4, %v547_v53, %v2355_v29 }
  0x8d   : > { %v361_v37 = vand.u32 2147483647, %v360_v30  ;;  %vm283_vm5 = vcmp.lt.s32.totalorder %v2195_v19, 0  ;;  %v549_v61 = vadd.s32 %v548_v49, %v544_v32  ;;  %v601_v62 = vor.u32 8388608, %v600_v34 }
  0x8e   : > { %v462_v43 = vadd.s32 127, %v461_v51  ;;  %v610_v47 = vshll.u32 %v1991_v50, %v607_v35  ;;  %v611_v63 = vshrl.u32 %v1992_v52, %v608_v55  ;;  %v613_v14 = vshll.u32 %v1992_v52, %v607_v35 }
  0x8f   : > { %v364_v39 = vmul.f32 %v363_v60, %v361_v37  ;;  %v614_v1 = vshrl.u32 %v1993_v54, %v608_v55  ;;  %v458_v3 = vshll.u32 %v2331_v40, %v456_v42  ;;  %v550_v33 = vadd.s32 536870912, %v549_v61 }
  0x90   : > { %v606_v36 = vshrl.u32 %v605_v31, 5  ;;  %v619_v7 = vshll.u32 %v1994_v56, %v607_v35  ;;  %v459_v8 = vshrl.u32 %v441_v45, %v457_v57  ;;  %v463_v46 = vshll.u32 %v462_v43, 23 }
  0x91   : > { %v616_v10 = vshll.u32 %v1993_v54, %v607_v35  ;;  %v617_v11 = vshrl.u32 %v1994_v56, %v608_v55  ;;  %vm2384_vm6 = vcmp.le.f32.partialorder %v281_v22, 0.7853982  ;;  %v365_v17 = vxor.u32 2147483648, %v364_v39 }
  0x92   : > { %v2388_v23 = vshrl.u32 %v550_v33, 30  ;;  %v620_v40 = vshrl.u32 %v1995_v58, %v608_v55  ;;  %v612_v25 = vor.u32 %v611_v63, %v610_v47  ;;  %v615_v2 = vor.u32 %v614_v1, %v613_v14 }
  0x93   : > { %v622_v27 = vshll.u32 %v1995_v58, %v607_v35  ;;  %v623_v29 = vshrl.u32 %v1996_v4, %v608_v55  ;;  %vm625_vm7 = vcmp.lt.s32.totalorder %v606_v36, 1  ;;  %v2394_v31 = vshll.u32 %v601_v62, 8 }
  0x94   : > { %v552_v41 = vshll.u32 %v2388_v23, 30  ;;  %v621_v30 = vor.u32 %v620_v40, %v619_v7  ;;  %v460_v22 = vor.u32 %v459_v8, %v458_v3  ;;  %v464_v32 = vor.u32 4788187, %v463_v46 }
  0x95   : > { %v609_v34 = vshrl.u32 %v1991_v50, %v608_v55  ;;  %v618_v37 = vor.u32 %v617_v11, %v616_v10  ;;  %v366_v60 = vsel %vm283_vm5, %v365_v17, %v364_v39  ;;  %vm627_vm8 = vcmp.lt.s32.totalorder %v606_v36, 3 }
  0x96   : > { %v2399_v42 = vsub.s32 %v549_v61, %v552_v41  ;;  %vm628_vm9 = vcmp.lt.s32.totalorder %v606_v36, 4  ;;  %v624_v35 = vor.u32 %v623_v29, %v622_v27  ;;  %vm626_vm10 = vcmp.lt.s32.totalorder %v606_v36, 2 }
  0x97   : > { %v630_v51 = vsel %vm628_vm9, %v618_v37, 2102212464  ;;  %v633_v53 = vsel %vm625_vm7, %v612_v25, %v615_v2  ;;  %v367_v45 = vsub.s32 4, %v2295_v48  ;;  %v471_v57 = vsub.s32 4, %v2322_v18 }
  0x98   : > { %v555_v55 = vsub.s32 0, %v2399_v42  ;;  %v634_v43 = vsel %vm628_vm9, %v621_v30, 920167782  ;;  %v369_v49 = vsel %vm2384_vm6, %v2195_v19, %v366_v60  ;;  %v465_v39 = vand.u32 2147483647, %v464_v32 }
  0x99   : > { %v467_v61 = vcvt.s32.f32 %v460_v22  ;;  %v635_v62 = vsel %vm627_vm8, %v618_v37, %v634_v43  ;;  %v629_v63 = vsel %vm625_vm7, %v609_v34, %v612_v25  ;;  %v631_v14 = vsel %vm627_vm8, %v615_v2, %v630_v51 }
  0x9a   : > { %v1697_v47 = vmin.u32 %v555_v55, %v2399_v42  ;;  %v636_v1 = vsel %vm626_vm10, %v633_v53, %v635_v62  ;;  %v637_v3 = vsel %vm625_vm7, %v615_v2, %v618_v37  ;;  %v638_v33 = vsel %vm628_vm9, %v624_v35, 1326507024 }
  0x9b   : > { %v2418_v7 = vmul.u32.u64.low %v2394_v31, %v636_v1  ;;  %v2419_v8 = vmul.u32.u64.high %v2394_v31, %v636_v1, %v2418_v7  ;;  %1839 = vcosq.f32 %v369_v49  ;;  %vm387_vm11 = vcmp.lt.s32.totalorder %v2198_v20, 0 }
  0x9c   : > { %v557_v46 = vclz %v1697_v47  ;;  %v368_v10 = vsel %vm283_vm5, %v367_v45, %v2295_v48  ;;  %1841 = vsinq.f32 %v369_v49  ;;  %v468_v11 = vmul.f32 %v467_v61, %v465_v39 }
  0x9d   : > { %v639_v17 = vsel %vm627_vm8, %v621_v30, %v638_v33  ;;  %v632_v25 = vsel %vm626_vm10, %v629_v63, %v631_v14  ;;  %v700_v27 = vand.u32 2139095040, %v2368_v12  ;;  %v472_v29 = vsel %vm387_vm11, %v471_v57, %v2322_v18 }
  0x9e   : > { %v1698_v40 = vadd.s32 4294967294, %v557_v46  ;;  %v640_v2 = vsel %vm626_vm10, %v637_v3, %v639_v17  ;;  %v545_v41 = vadd.s32 %v2354_v28, %v2351_v26  ;;  %v575_v30 = vsub.s32 4, %v2388_v23 }
  0x9f   : > { %v2436_v48 = vmul.u32.u64.low %v2394_v31, %v640_v2  ;;  %v2437_v22 = vmul.u32.u64.high %v2394_v31, %v640_v2, %v2436_v48  ;;  %v651_v32 = vadd.s32 1, %v2419_v8  ;;  %v701_v36 = vshrl.u32 %v700_v27, 23 }
  0xa0   : > { %vm1699_vm12 = vcmp.lt.s32.totalorder %v1698_v40, 0  ;;  %v469_v34 = vxor.u32 2147483648, %v468_v11  ;;  %vm491_vm13 = vcmp.lt.s32.totalorder %v2201_v21, 0  ;;  %v648_v60 = vmul.u32 %v2394_v31, %v632_v25 }
  0xa1   : > { %v560_v37 = vsel %vm1699_vm12, 0, %v1698_v40  ;;  %vm2445_vm14 = vcmp.le.f32.partialorder %v385_v24, 0.7853982  ;;  %v2452_v51 = vsel %vm2384_vm6, 0, %v368_v10  ;;  %vm650_vm15 = vc.u32 %v2437_v22, %v2418_v7 }
  0xa2   : > { %v561_v26 = vsub.s32 32, %v560_v37  ;;  %v562_v28 = vshll.u32 %v2399_v42, %v560_v37  ;;  %v565_v35 = vsub.s32 4294967266, %v560_v37  ;;  %v2456_v53 = vsel %vm2445_vm14, 0, %v472_v29 }
  0xa3   : > { %v1704_v31 = vadd.s32 4294967169, %v701_v36  ;;  %v576_v57 = vsel %vm491_vm13, %v575_v30, %v2388_v23  ;;  %v652_v42 = vsel %vm650_vm15, %v651_v32, %v2419_v8  ;;  %v470_v16 = vsel %vm387_vm11, %v469_v34, %v468_v11 }
  0xa4   : > { %v563_v24 = vshrl.u32 %v545_v41, %v561_v26  ;;  %v566_v45 = vadd.s32 127, %v565_v35  ;;  %v653_v55 = vadd.s32 %v652_v42, %v648_v60  ;;  %v697_v43 = vand.u32 2147483647, %v2368_v12 }
  0xa5   : > { %v707_v49 = vadd.s32 1, %v1704_v31  ;;  %v261_v39 = vadd.f32 %v2183_v13, %v243_v0  ;;  %vm2472_vm0 = vcmp.le.f32.partialorder %v489_v44, 0.7853982  ;;  %v374_v47 = vadd.s32 3, %v2452_v51 }
  0xa6   : > { %v564_v23 = vor.u32 %v563_v24, %v562_v28  ;;  %v567_v62 = vshll.u32 %v566_v45, 23  ;;  %v478_v63 = vadd.s32 3, %v2456_v53  ;;  %v654_v14 = vadd.s32 536870912, %v653_v55 }
  0xa7   : > { %vm708_vm1 = vcmp.gt.s32.totalorder %v707_v49, 0  ;;  %v473_v9 = vsel %vm2445_vm14, %v2198_v20, %v470_v16  ;;  %v2483_v13 = vsel %vm2472_vm0, 0, %v576_v57  ;;  %v704_v8 = vand.u32 8388607, %v697_v43 }
  0xa8   : > { %v568_v1 = vor.u32 4788187, %v567_v62  ;;  %v709_v44 = vsel %vm708_vm1, %v707_v49, 0  ;;  %v2485_v0 = vpop.eup %1839  ;;  %v571_v3 = vcvt.s32.f32 %v564_v23  ;;  %v2487_v33 = vshrl.u32 %v654_v14, 30 }
  0xa9   : > { %v711_v46 = vand.u32 31, %v709_v44  ;;  %v2491_v10 = vpop.eup %1841  ;;  %v2494_v17 = vmul.f32 %v2189_v15, %v261_v39  ;;  %1843 = vcosq.f32 %v473_v9  ;;  %v2497_v2 = vand.u32 3, %v374_v47 }
  0xaa   : > { %v569_v11 = vand.u32 2147483647, %v568_v1  ;;  %v656_v40 = vshll.u32 %v2487_v33, 30  ;;  %1845 = vsinq.f32 %v473_v9  ;;  %v2499_v27 = vand.u32 3, %v478_v63 }
  0xab   : > { %v712_v25 = vsub.s32 32, %v711_v46  ;;  %v2502_v29 = vadd.s32 3, %v2483_v13  ;;  %v381_v41 = vxor.u32 2147483648, %v2485_v0  ;;  %v705_v32 = vor.u32 8388608, %v704_v8 }
  0xac   : > { %v572_v48 = vmul.f32 %v571_v3, %v569_v11  ;;  %v2505_v30 = vsub.s32 %v653_v55, %v656_v40  ;;  %v378_v15 = vxor.u32 2147483648, %v2491_v10  ;;  %v714_v36 = vshll.u32 %v1991_v50, %v711_v46 }
  0xad   : > { %v715_v34 = vshrl.u32 %v1992_v52, %v712_v25  ;;  %v717_v37 = vshll.u32 %v1992_v52, %v711_v46  ;;  %v718_v18 = vshrl.u32 %v1993_v54, %v712_v25  ;;  %v801_v26 = vand.u32 2147483647, %v2494_v17 }
  0xae   : > { %v659_v60 = vsub.s32 0, %v2505_v30  ;;  %v804_v28 = vand.u32 2139095040, %v2494_v17  ;;  %v710_v35 = vshrl.u32 %v709_v44, 5  ;;  %v720_v31 = vshll.u32 %v1993_v54, %v711_v46 }
  0xaf   : > { %v721_v24 = vshrl.u32 %v1994_v56, %v712_v25  ;;  %v723_v45 = vshll.u32 %v1994_v56, %v711_v46  ;;  %vm377_vm2 = vcmp.eq.s32.totalorder %v2497_v2, 0  ;;  %vm380_vm3 = vcmp.eq.s32.totalorder %v2497_v2, 2 }
  0xb0   : > { %v573_v57 = vxor.u32 2147483648, %v572_v48  ;;  %v649_v42 = vadd.s32 %v2418_v7, %v2437_v22  ;;  %v1701_v16 = vmin.u32 %v659_v60, %v2505_v30  ;;  %v2523_v55 = vshll.u32 %v705_v32, 8 }
  0xb1   : > { %v716_v49 = vor.u32 %v715_v34, %v714_v36  ;;  %v719_v39 = vor.u32 %v718_v18, %v717_v37  ;;  %v724_v23 = vshrl.u32 %v1995_v58, %v712_v25  ;;  %v726_v62 = vshll.u32 %v1995_v58, %v711_v46 }
  0xb2   : > { %v661_v47 = vclz %v1701_v16  ;;  %v679_v63 = vsub.s32 4, %v2487_v33  ;;  %v713_v14 = vshrl.u32 %v1991_v50, %v712_v25  ;;  %v805_v9 = vshrl.u32 %v804_v28, 23 }
  0xb3   : > { %v722_v1 = vor.u32 %v721_v24, %v720_v31  ;;  %v725_v44 = vor.u32 %v724_v23, %v723_v45  ;;  %v727_v7 = vshrl.u32 %v1996_v4, %v712_v25  ;;  %vm729_vm4 = vcmp.lt.s32.totalorder %v710_v35, 1 }
  0xb4   : > { %v574_v22 = vsel %vm491_vm13, %v573_v57, %v572_v48  ;;  %v1702_v3 = vadd.s32 4294967294, %v661_v47  ;;  %vm731_vm5 = vcmp.lt.s32.totalorder %v710_v35, 3  ;;  %vm732_vm6 = vcmp.lt.s32.totalorder %v710_v35, 4 }
  0xb5   : > { %vm595_vm7 = vcmp.lt.s32.totalorder %v2293_v38, 0  ;;  %v728_v8 = vor.u32 %v727_v7, %v726_v62  ;;  %vm730_vm8 = vcmp.lt.s32.totalorder %v710_v35, 2  ;;  %v734_v46 = vsel %vm732_vm6, %v722_v1, 2102212464 }
  0xb6   : > { %v737_v11 = vsel %vm729_vm4, %v716_v49, %v719_v39  ;;  %vm1703_vm9 = vcmp.lt.s32.totalorder %v1702_v3, 0  ;;  %v733_v40 = vsel %vm729_vm4, %v713_v14, %v716_v49  ;;  %v735_v25 = vsel %vm731_vm5, %v719_v39, %v734_v46  ;;  %v2538_v36 = vpop.eup %1843 }
  0xb7   : > { %v738_v32 = vsel %vm732_vm6, %v725_v44, 920167782  ;;  %vm376_vm10 = vcmp.lt.s32.totalorder %v2497_v2, 2  ;;  %vm484_vm11 = vcmp.eq.s32.totalorder %v2499_v27, 2  ;;  %v664_v48 = vsel %vm1703_vm9, 0, %v1702_v3  ;;  %v2545_v18 = vpop.eup %1845 }
  0xb8   : > { %v739_v34 = vsel %vm731_vm5, %v722_v1, %v738_v32  ;;  %v741_v37 = vsel %vm729_vm4, %v719_v39, %v722_v1  ;;  %v742_v60 = vsel %vm732_vm6, %v728_v8, 1326507024  ;;  %vm2549_vm12 = vcmp.le.f32.partialorder %v593_v59, 0.7853982 }
  0xb9   : > { %v665_v31 = vsub.s32 32, %v664_v48  ;;  %v666_v24 = vshll.u32 %v2505_v30, %v664_v48  ;;  %v669_v45 = vsub.s32 4294967266, %v664_v48  ;;  %v740_v57 = vsel %vm730_vm8, %v737_v11, %v739_v34 }
  0xba   : > { %v736_v16 = vsel %vm730_vm8, %v733_v40, %v735_v25  ;;  %v743_v49 = vsel %vm731_vm5, %v725_v44, %v742_v60  ;;  %v2558_v39 = vmul.u32.u64.low %v2523_v55, %v740_v57  ;;  %v2559_v23 = vmul.u32.u64.high %v2523_v55, %v740_v57, %v2558_v39 }
  0xbb   : > { %v667_v62 = vshrl.u32 %v649_v42, %v665_v31  ;;  %v670_v59 = vadd.s32 127, %v669_v45  ;;  %v744_v47 = vsel %vm730_vm8, %v741_v37, %v743_v49  ;;  %v1708_v14 = vadd.s32 4294967169, %v805_v9 }
  0xbc   : > { %v379_v30 = vsel %vm377_vm2, %v2485_v0, %v378_v15  ;;  %v382_v1 = vsel %vm380_vm3, %v381_v41, %v2491_v10  ;;  %v2574_v44 = vmul.u32.u64.low %v2523_v55, %v744_v47  ;;  %v2575_v7 = vmul.u32.u64.high %v2523_v55, %v744_v47, %v2574_v44 }
  0xbd   : > { %v577_v35 = vsel %vm2472_vm0, %v2201_v21, %v574_v22  ;;  %v668_v42 = vor.u32 %v667_v62, %v666_v24  ;;  %v671_v9 = vshll.u32 %v670_v59, 23  ;;  %v811_v3 = vadd.s32 1, %v1708_v14 }
  0xbe   : > { %v485_v8 = vxor.u32 2147483648, %v2538_v36  ;;  %v752_v46 = vmul.u32 %v2523_v55, %v736_v16  ;;  %v755_v11 = vadd.s32 1, %v2559_v23  ;;  %v2585_v40 = vand.u32 8388607, %v801_v26 }
  0xbf   : > { %v672_v25 = vor.u32 4788187, %v671_v9  ;;  %v675_v32 = vcvt.s32.f32 %v668_v42  ;;  %v680_v61 = vsel %vm595_vm7, %v679_v63, %v2487_v33  ;;  %vm812_vm13 = vcmp.gt.s32.totalorder %v811_v3, 0 }
  0xc0   : > { %vm373_vm14 = vweird.f32 %v2195_v19  ;;  %v482_v22 = vxor.u32 2147483648, %v2545_v18  ;;  %1847 = vcosq.f32 %v577_v35  ;;  %vm754_vm15 = vc.u32 %v2575_v7, %v2558_v39 }
  0xc1   : > { %v813_v55 = vsel %vm812_vm13, %v811_v3, 0  ;;  %vm480_vm0 = vcmp.lt.s32.totalorder %v2499_v27, 2  ;;  %vm481_vm1 = vcmp.eq.s32.totalorder %v2499_v27, 0  ;;  %1849 = vsinq.f32 %v577_v35 }
  0xc2   : > { %v673_v48 = vand.u32 2147483647, %v672_v25  ;;  %v756_v34 = vsel %vm754_vm15, %v755_v11, %v2559_v23  ;;  %v2598_v33 = vand.u32 3, %v2502_v29  ;;  %v2602_v63 = vsel %vm2549_vm12, 0, %v680_v61 }
  0xc3   : > { %v757_v37 = vadd.s32 %v756_v34, %v752_v46  ;;  %v815_v60 = vand.u32 31, %v813_v55  ;;  %v383_v31 = vsel %vm376_vm10, %v379_v30, %v382_v1  ;;  %v486_v24 = vsel %vm484_vm11, %v485_v8, %v2545_v18 }
  0xc4   : > { %v676_v45 = vmul.f32 %v675_v32, %v673_v48  ;;  %v809_v57 = vor.u32 8388608, %v2585_v40  ;;  %v483_v29 = vsel %vm481_vm1, %v2538_v36, %v482_v22  ;;  %v2615_v49 = vshrl.u32 %v813_v55, 5 }
  0xc5   : > { %v758_v16 = vadd.s32 536870912, %v757_v37  ;;  %v816_v23 = vsub.s32 32, %v815_v60  ;;  %vm477_vm2 = vweird.f32 %v2198_v20  ;;  %v686_v62 = vadd.s32 3, %v2602_v63 }
  0xc6   : > { %v677_v2 = vxor.u32 2147483648, %v676_v45  ;;  %v818_v59 = vshll.u32 %v1991_v50, %v815_v60  ;;  %v821_v47 = vshll.u32 %v1992_v52, %v815_v60  ;;  %v824_v44 = vshll.u32 %v1993_v54, %v815_v60 }
  0xc7   : > { %v2621_v14 = vshrl.u32 %v758_v16, 30  ;;  %v819_v30 = vshrl.u32 %v1992_v52, %v816_v23  ;;  %v822_v1 = vshrl.u32 %v1993_v54, %v816_v23  ;;  %v825_v42 = vshrl.u32 %v1994_v56, %v816_v23 }
  0xc8   : > { %v678_v35 = vsel %vm595_vm7, %v677_v2, %v676_v45  ;;  %v827_v9 = vshll.u32 %v1994_v56, %v815_v60  ;;  %v828_v3 = vshrl.u32 %v1995_v58, %v816_v23  ;;  %v817_v52 = vshrl.u32 %v1991_v50, %v816_v23 }
  0xc9   : > { %v681_v46 = vsel %vm2549_vm12, %v2293_v38, %v678_v35  ;;  %v760_v11 = vshll.u32 %v2621_v14, 30  ;;  %vm833_vm3 = vcmp.lt.s32.totalorder %v2615_v49, 1  ;;  %vm588_vm4 = vcmp.eq.s32.totalorder %v2598_v33, 2 }
  0xca   : > { %1851 = vcosq.f32 %v681_v46  ;;  %v820_v54 = vor.u32 %v819_v30, %v818_v59  ;;  %v823_v40 = vor.u32 %v822_v1, %v821_v47  ;;  %v829_v25 = vor.u32 %v828_v3, %v827_v9  ;;  %v2695_v3 = vld [vmem:[%s2904_s3] sm:$0x3] }
  0xcb   : > { %vm585_vm5 = vcmp.eq.s32.totalorder %v2598_v33, 0  ;;  %1853 = vsinq.f32 %v681_v46  ;;  %v2639_v56 = vsub.s32 %v757_v37, %v760_v11  ;;  %v826_v32 = vor.u32 %v825_v42, %v824_v44 }
  0xcc   : > { %v830_v28 = vshll.u32 %v1995_v58, %v815_v60  ;;  %v2644_v61 = vsel %vm373_vm14, nan, %v383_v31  ;;  %v831_v50 = vshrl.u32 %v1996_v4, %v816_v23  ;;  %vm835_vm6 = vcmp.lt.s32.totalorder %v2615_v49, 3 }
  0xcd   : > { %vm836_vm7 = vcmp.lt.s32.totalorder %v2615_v49, 4  ;;  %v487_v55 = vsel %vm480_vm0, %v483_v29, %v486_v24  ;;  %v763_v48 = vsub.s32 0, %v2639_v56  ;;  %vm834_vm8 = vcmp.lt.s32.totalorder %v2615_v49, 2  ;;  %v2655_v34 = vpop.eup %1847 }
  0xce   : > { %v838_v58 = vsel %vm836_vm7, %v826_v32, 2102212464  ;;  %v832_v37 = vor.u32 %v831_v50, %v830_v28  ;;  %v841_v4 = vsel %vm833_vm3, %v820_v54, %v823_v40  ;;  %v842_v60 = vsel %vm836_vm7, %v829_v25, 920167782  ;;  %v2661_v45 = vpop.eup %1849 }
  0xcf   : > { %v849_v31 = vshll.u32 %v809_v57, 8  ;;  %v2663_v27 = vand.u32 3, %v686_v62  ;;  %v1705_v24 = vmin.u32 %v763_v48, %v2639_v56  ;;  %v837_v29 = vsel %vm833_vm3, %v817_v52, %v820_v54 }
  0xd0   : > { %v843_v16 = vsel %vm835_vm6, %v826_v32, %v842_v60  ;;  %vm584_vm9 = vcmp.lt.s32.totalorder %v2598_v33, 2  ;;  %v839_v23 = vsel %vm835_vm6, %v823_v40, %v838_v58  ;;  %v845_v2 = vsel %vm833_vm3, %v823_v40, %v826_v32 }
  0xd1   : > { %v844_v57 = vsel %vm834_vm8, %v841_v4, %v843_v16  ;;  %v846_v62 = vsel %vm836_vm7, %v832_v37, 1326507024  ;;  %v2681_v59 = vsel %vm477_vm2, nan, %v487_v55  ;;  %v589_v47 = vxor.u32 2147483648, %v2655_v34 }
  0xd2   : > { %v765_v30 = vclz %v1705_v24  ;;  %v1016_v1 = vand.u32 3, %v2452_v51  ;;  %v586_v44 = vxor.u32 2147483648, %v2661_v45  ;;  %v847_v35 = vsel %vm835_vm6, %v829_v25, %v846_v62 }
  0xd3   : > { %v2688_v42 = vmul.u32.u64.low %v849_v31, %v844_v57  ;;  %v2689_v9 = vmul.u32.u64.high %v849_v31, %v844_v57, %v2688_v42  ;;  %vm692_vm10 = vcmp.eq.s32.totalorder %v2663_v27, 2  ;;  %v840_v51 = vsel %vm834_vm8, %v837_v29, %v839_v23 }
  0xd4   : > { %v1706_v46 = vadd.s32 4294967294, %v765_v30  ;;  %v848_v11 = vsel %vm834_vm8, %v845_v2, %v847_v35  ;;  %vm689_vm11 = vcmp.eq.s32.totalorder %v2663_v27, 0  ;;  %v753_v52 = vadd.s32 %v2558_v39, %v2575_v7 }
  0xd5   : > { %v2705_v54 = vmul.u32.u64.low %v849_v31, %v848_v11  ;;  %v2706_v40 = vmul.u32.u64.high %v849_v31, %v848_v11, %v2705_v54  ;;  %v2710_v25 = vrot.slane %v2695_v3, %v2170_v5  ;;  %v590_v32 = vsel %vm588_vm4, %v589_v47, %v2661_v45 }
  0xd6   : > { %vm1707_vm12 = vcmp.lt.s32.totalorder %v1706_v46, 0  ;;  %vm1018_vm13 = vcmp.eq.s32.totalorder %v1016_v1, 0  ;;  %vm1021_vm15 = vcmp.eq.s32.totalorder %v1016_v1, 2  ;;  %v587_v39 = vsel %vm585_vm5, %v2655_v34, %v586_v44 }
  0xd7   : > { %v768_v7 = vsel %vm1707_vm12, 0, %v1706_v46  ;;  %v856_v49 = vmul.u32 %v849_v31, %v840_v51  ;;  %v859_v28 = vadd.s32 1, %v2689_v9  ;;  %v1852_v50 = vpop.eup %1851  ;;  %vm1017_vm0 = vcmp.lt.s32.totalorder %v1016_v1, 2 }
  0xd8   : > { %v769_v55 = vsub.s32 32, %v768_v7  ;;  %v770_v48 = vshll.u32 %v2639_v56, %v768_v7  ;;  %v773_v58 = vsub.s32 4294967266, %v768_v7  ;;  %v1854_v37 = vpop.eup %1853  ;;  %vm688_vm1 = vcmp.lt.s32.totalorder %v2663_v27, 2 }
  0xd9   : > { %vm858_vm3 = vc.u32 %v2706_v40, %v2688_v42  ;;  %v1020_v4 = vsel %vm1018_vm13, %v2485_v0, %v378_v15  ;;  %v1023_v60 = vsel %vm1021_vm15, %v381_v41, %v2491_v10  ;;  %v1119_v31 = vand.u32 3, %v2456_v53 }
  0xda   : > { %vm581_vm4 = vweird.f32 %v2201_v21  ;;  %v693_v56 = vxor.u32 2147483648, %v1852_v50  ;;  %v771_v24 = vshrl.u32 %v753_v52, %v769_v55  ;;  %v774_v29 = vadd.s32 127, %v773_v58 }
  0xdb   : > { %v860_v16 = vsel %vm858_vm3, %v859_v28, %v2689_v9  ;;  %vm699_vm5 = vcmp.lt.s32.totalorder %v2368_v12, 0  ;;  %v2739_v57 = vrot.slane %v2695_v3, %v2173_v6  ;;  %v922_v15 = vsub.f32 1.0, %v2695_v3 }
  0xdc   : > { %v861_v23 = vadd.s32 %v860_v16, %v856_v49  ;;  %v1222_v0 = vand.u32 3, %v2483_v13  ;;  %v591_v53 = vsel %vm584_vm9, %v587_v39, %v590_v32  ;;  %vm685_vm6 = vweird.f32 %v2293_v38 }
  0xdd   : > { %v690_v10 = vxor.u32 2147483648, %v1854_v37  ;;  %vm2748_vm7 = vcmp.le.f32.partialorder %v697_v43, 0.7853982  ;;  %v772_v2 = vor.u32 %v771_v24, %v770_v48  ;;  %v775_v62 = vshll.u32 %v774_v29, 23 }
  0xde   : > { %v783_v30 = vsub.s32 4, %v2621_v14  ;;  %v862_v35 = vadd.s32 536870912, %v861_v23  ;;  %v1024_v9 = vsel %vm1017_vm0, %v1020_v4, %v1023_v60  ;;  %v1325_v13 = vand.u32 3, %v2602_v63 }
  0xdf   : > { %v694_v33 = vsel %vm692_vm10, %v693_v56, %v1854_v37  ;;  %v776_v3 = vor.u32 4788187, %v775_v62  ;;  %v779_v46 = vcvt.s32.f32 %v772_v2  ;;  %vm1120_vm8 = vcmp.lt.s32.totalorder %v1119_v31, 2 }
  0xe0   : > { %v2757_v51 = vshrl.u32 %v862_v35, 30  ;;  %vm1121_vm9 = vcmp.eq.s32.totalorder %v1119_v31, 0  ;;  %vm1124_vm12 = vcmp.eq.s32.totalorder %v1119_v31, 2  ;;  %vm1224_vm13 = vcmp.eq.s32.totalorder %v1222_v0, 0 }
  0xe1   : > { %v691_v43 = vsel %vm689_vm11, %v1852_v50, %v690_v10  ;;  %v777_v11 = vand.u32 2147483647, %v776_v3  ;;  %vm1223_vm15 = vcmp.lt.s32.totalorder %v1222_v0, 2  ;;  %vm1227_vm3 = vcmp.eq.s32.totalorder %v1222_v0, 2 }
  0xe2   : > { %v864_v1 = vshll.u32 %v2757_v51, 30  ;;  %v1226_v63 = vsel %vm1224_vm13, %v2655_v34, %v586_v44  ;;  %v1229_v52 = vsel %vm1227_vm3, %v589_v47, %v2661_v45  ;;  %vm1327_vm10 = vcmp.eq.s32.totalorder %v1325_v13, 0 }
  0xe3   : > { %v780_v54 = vmul.f32 %v779_v46, %v777_v11  ;;  %v1123_v32 = vsel %vm1121_vm9, %v2538_v36, %v482_v22  ;;  %v1126_v39 = vsel %vm1124_vm12, %v485_v8, %v2545_v18  ;;  %vm1330_vm11 = vcmp.eq.s32.totalorder %v1325_v13, 2 }
  0xe4   : > { %v2774_v7 = vsub.s32 %v861_v23, %v864_v1  ;;  %vm1326_vm0 = vcmp.lt.s32.totalorder %v1325_v13, 2  ;;  %v1329_v49 = vsel %vm1327_vm10, %v1852_v50, %v690_v10  ;;  %v1332_v44 = vsel %vm1330_vm11, %v693_v56, %v1854_v37  ;;  %v1564_v23 = vld [vmem:[%s2151_s11] sm:$0xff]  ;;  %v1566_v10 = vld [vmem:[%s2151_s11 + $0x10] sm:$0xff] }
  0xe5   : > { %v695_v34 = vsel %vm688_vm1, %v691_v43, %v694_v33  ;;  %v781_v45 = vxor.u32 2147483648, %v780_v54  ;;  %v916_v47 = vmul.f32 %v2710_v25, %v2644_v61  ;;  %v1230_v28 = vsel %vm1223_vm15, %v1226_v63, %v1229_v52 }
  0xe6   : > { %v592_v22 = vsel %vm581_vm4, nan, %v591_v53  ;;  %v784_v36 = vsel %vm699_vm5, %v783_v30, %v2621_v14  ;;  %v867_v18 = vsub.s32 0, %v2774_v7  ;;  %v917_v8 = vmul.f32 %v2739_v57, %v2681_v59 }
  0xe7   : > { %v782_v27 = vsel %vm699_vm5, %v781_v45, %v780_v54  ;;  %v1025_v61 = vsel %vm373_vm14, nan, %v1024_v9  ;;  %v1127_v50 = vsel %vm1120_vm8, %v1123_v32, %v1126_v39  ;;  %v1333_v55 = vsel %vm1326_vm0, %v1329_v49, %v1332_v44 }
  0xe8   : > { %v696_v48 = vsel %vm685_vm6, nan, %v695_v34  ;;  %v785_v14 = vsel %vm2748_vm7, %v2368_v12, %v782_v27  ;;  %v1709_v58 = vmin.u32 %v867_v18, %v2774_v7  ;;  %v1231_v59 = vsel %vm581_vm4, nan, %v1230_v28 }
  0xe9   : > { %v786_v19 = vsel %vm2748_vm7, 0, %v784_v36  ;;  %1855 = vcosq.f32 %v785_v14  ;;  %v918_v37 = vmul.f32 %v2710_v25, %v592_v22  ;;  %v2806_v4 = vrot.slane %v922_v15, %v2170_v5 }
  0xea   : > { %1857 = vsinq.f32 %v785_v14  ;;  %v869_v60 = vclz %v1709_v58  ;;  %v1128_v31 = vsel %vm477_vm2, nan, %v1127_v50  ;;  %v1334_v21 = vsel %vm685_vm6, nan, %v1333_v55 }
  0xeb   : > { %v919_v56 = vmul.f32 %v2739_v57, %v696_v48  ;;  %v2814_v24 = vrot.slane %v922_v15, %v2173_v6  ;;  %v1552_v29 = vmul.f32 %v2806_v4, %v1025_v61  ;;  %v1554_v5 = vmul.f32 %v2806_v4, %v1231_v59  ;;  %v1565_v6 = vld [vmem:[%s2151_s11 + $0x8] sm:$0xff]  ;;  %v1567_v15 = vld [vmem:[%s2151_s11 + $0x18] sm:$0xff]  ;;  %v1568_v59 = vld [vmem:[%s2151_s11 + $0x20] sm:$0xff] }
  0xec   : > { %v1710_v16 = vadd.s32 4294967294, %v869_v60  ;;  %v790_v41 = vadd.s32 3, %v786_v19  ;;  %v857_v2 = vadd.s32 %v2688_v42, %v2706_v40  ;;  %v1428_v63 = vand.u32 3, %v786_v19 }
  0xed   : > { %v1553_v0 = vmul.f32 %v2814_v24, %v1128_v31  ;;  %v1555_v20 = vmul.f32 %v2814_v24, %v1334_v21  ;;  %v1558_v53 = vadd.f32 %v1552_v29, %v916_v47  ;;  %v1560_v38 = vadd.f32 %v1554_v5, %v918_v37 }
  0xee   : > { %vm1711_vm14 = vcmp.lt.s32.totalorder %v1710_v16, 0  ;;  %v791_v42 = vand.u32 3, %v790_v41  ;;  %vm1433_vm1 = vcmp.eq.s32.totalorder %v1428_v63, 2  ;;  %vm1430_vm5 = vcmp.eq.s32.totalorder %v1428_v63, 0 }
  0xef   : > { %v872_v62 = vsel %vm1711_vm14, 0, %v1710_v16  ;;  %v1559_v30 = vadd.f32 %v1553_v0, %v917_v8  ;;  %v1561_v35 = vadd.f32 %v1555_v20, %v919_v56  ;;  %v1570_v9 = vadd.f32 %v1564_v23, %v1558_v53 }
  0xf0   : > { %v873_v13 = vsub.s32 32, %v872_v62  ;;  %v874_v33 = vshll.u32 %v2774_v7, %v872_v62  ;;  %v877_v3 = vsub.s32 4294967266, %v872_v62  ;;  %v1572_v46 = vadd.f32 %v1566_v10, %v1560_v38 }
  0xf1   : > { %v1571_v43 = vadd.f32 %v1565_v6, %v1559_v30  ;;  %v1573_v11 = vadd.f32 %v1567_v15, %v1561_v35  ;;  %1576 = vst [vmem:[%s2829_s30] sm:$0xff] %v1570_v9  ;;  %vm796_vm2 = vcmp.eq.s32.totalorder %v791_v42, 2  ;;  %vm793_vm4 = vcmp.eq.s32.totalorder %v791_v42, 0  ;;  %v1569_v15 = vld [vmem:[%s2151_s11 + $0x28] sm:$0xff] }
  0xf2   : > { %v875_v40 = vshrl.u32 %v857_v2, %v873_v13  ;;  %v878_v1 = vadd.s32 127, %v877_v3  ;;  %1578 = vst [vmem:[%s2829_s30 + $0x10] sm:$0xff] %v1572_v46  ;;  %vm792_vm6 = vcmp.lt.s32.totalorder %v791_v42, 2  ;;  %vm1429_vm7 = vcmp.lt.s32.totalorder %v1428_v63, 2 }
  0xf3   : > { %1577 = vst [vmem:[%s2829_s30 + $0x8] sm:$0xff] %v1571_v43  ;;  %1579 = vst [vmem:[%s2829_s30 + $0x18] sm:$0xff] %v1573_v11  ;;  %vm789_vm8 = vweird.f32 %v2368_v12  ;;  %vm803_vm9 = vcmp.lt.s32.totalorder %v2494_v17, 0  ;;  %v887_v27 = vsub.s32 4, %v2757_v51  ;;  %vm802_vm12 = vcmp.le.f32.partialorder %v801_v26, 0.7853982 }
  0xf4   : > { %v876_v52 = vor.u32 %v875_v40, %v874_v33  ;;  %v879_v54 = vshll.u32 %v878_v1, 23  ;;  %vm893_vm14 = vweird.f32 %v2494_v17 }
  0xf5   : > { %v888_v19 = vsel %vm803_vm9, %v887_v27, %v2757_v51 }
  0xf6   : > { %v1856_v32 = vpop.eup %1855  ;;  %v880_v39 = vor.u32 4788187, %v879_v54  ;;  %v883_v7 = vcvt.s32.f32 %v876_v52  ;;  %v890_v21 = vsel %vm802_vm12, 0, %v888_v19 }
  0xf7   : > { %v1858_v49 = vpop.eup %1857  ;;  %v797_v44 = vxor.u32 2147483648, %v1856_v32  ;;  %v894_v56 = vadd.s32 3, %v890_v21  ;;  %v1531_v29 = vand.u32 3, %v890_v21 }
  0xf8   : > { %v794_v34 = vxor.u32 2147483648, %v1858_v49  ;;  %v881_v45 = vand.u32 2147483647, %v880_v39 }
  0xf9   : > { %v798_v47 = vsel %vm796_vm2, %v797_v44, %v1858_v49  ;;  %v1435_v28 = vsel %vm1433_vm1, %v797_v44, %v1858_v49  ;;  %v895_v26 = vand.u32 3, %v894_v56  ;;  %vm1536_vm15 = vcmp.eq.s32.totalorder %v1531_v29, 2 }
  0xfa   : > { %v795_v22 = vsel %vm793_vm4, %v1856_v32, %v794_v34  ;;  %v884_v36 = vmul.f32 %v883_v7, %v881_v45  ;;  %v1432_v18 = vsel %vm1430_vm5, %v1856_v32, %v794_v34  ;;  %vm1533_vm10 = vcmp.eq.s32.totalorder %v1531_v29, 0 }
  0xfb   : > { %v799_v8 = vsel %vm792_vm6, %v795_v22, %v798_v47  ;;  %v1436_v61 = vsel %vm1429_vm7, %v1432_v18, %v1435_v28  ;;  %vm900_vm13 = vcmp.eq.s32.totalorder %v895_v26, 2  ;;  %vm897_vm3 = vcmp.eq.s32.totalorder %v895_v26, 0 }
  0xfc   : > { %v800_v50 = vsel %vm789_vm8, nan, %v799_v8  ;;  %v885_v55 = vxor.u32 2147483648, %v884_v36  ;;  %v1437_v48 = vsel %vm789_vm8, nan, %v1436_v61  ;;  %vm896_vm11 = vcmp.lt.s32.totalorder %v895_v26, 2 }
  0xfd   : > { %v920_v12 = vmul.f32 %v2710_v25, %v800_v50  ;;  %v1556_v14 = vmul.f32 %v2806_v4, %v1437_v48  ;;  %vm1532_vm0 = vcmp.lt.s32.totalorder %v1531_v29, 2 }
  0xfe   : > { %v886_v58 = vsel %vm803_vm9, %v885_v55, %v884_v36 }
  0xff   : > { %v889_v37 = vsel %vm802_vm12, %v2494_v17, %v886_v58  ;;  %v1562_v60 = vadd.f32 %v1556_v14, %v920_v12 }
 0x100   : > { %1859 = vcosq.f32 %v889_v37 }
 0x101   : > { %1861 = vsinq.f32 %v889_v37  ;;  %v1574_v31 = vadd.f32 %v1568_v59, %v1562_v60 }
 0x103   : > { %1580 = vst [vmem:[%s2829_s30 + $0x20] sm:$0xff] %v1574_v31 }
 0x10d   : > { %v1860_v5 = vpop.eup %1859 }
 0x10e   : > { %v1862_v25 = vpop.eup %1861  ;;  %v901_v4 = vxor.u32 2147483648, %v1860_v5 }
 0x10f   : > { %v898_v51 = vxor.u32 2147483648, %v1862_v25 }
 0x110   : > { %v902_v16 = vsel %vm900_vm13, %v901_v4, %v1862_v25  ;;  %v1538_v23 = vsel %vm1536_vm15, %v901_v4, %v1862_v25 }
 0x111   : > { %v899_v0 = vsel %vm897_vm3, %v1860_v5, %v898_v51  ;;  %v1535_v20 = vsel %vm1533_vm10, %v1860_v5, %v898_v51 }
 0x112   : > { %v903_v53 = vsel %vm896_vm11, %v899_v0, %v902_v16  ;;  %v1539_v38 = vsel %vm1532_vm0, %v1535_v20, %v1538_v23 }
 0x113   : > { %v904_v10 = vsel %vm893_vm14, nan, %v903_v53  ;;  %v1540_v41 = vsel %vm893_vm14, nan, %v1539_v38 }
 0x114   : > { %v921_v2 = vmul.f32 %v2739_v57, %v904_v10  ;;  %v1557_v6 = vmul.f32 %v2814_v24, %v1540_v41 }
 0x116   : > { %v1563_v62 = vadd.f32 %v1557_v6, %v921_v2 }
 0x118   : > { %v1575_v17 = vadd.f32 %v1569_v15, %v1563_v62 }
 0x11a   : > { %1581 = vst [vmem:[%s2829_s30 + $0x28] sm:$0xff] %v1575_v17 }
 0x11b   : > { %1930 = shalt.err (!%p1927_p0)
}
 0x11c   : > { %s1931_s11 = scalar_lea.hbm %s2855_s22, 768  ;;  %s1935_s8 = scalar_lea.hbm %s2905_s4, 1536 }
 0x11d   : > { %p1932_p4 = scmp.ne.s32.totalorder %s2855_s22, %s1931_s11  ;;  %p1936_p6 = scmp.lt.s32.totalorder %s2855_s22, %s2905_s4 }
 0x11e   : > { %p1937_p13 = scmp.lt.s32.totalorder %s1935_s8, %s1931_s11 }
 0x11f   : > { %p1933_p11 = pnand %p1932_p4, %p2932_p1 }
 0x120   : > { %p1938_p3 = por %p1937_p13, %p1936_p6 }
 0x121   : > { %p1934_p5 = pneg %p1933_p11 }
 0x123   : > { %p1939_p12 = pnand %p1938_p3, %p1934_p5 }
 0x125   : > { %1942 = shalt.err (!%p1939_p12)
}
 0x126   : > { %s1998_s30 = smov 256   ;;  %s1999_s12 = smov 16  }
 0x127   : > { %1778 = dma.vmem_to_hbm [thread:$0]  (%p2932_p1), %s2857_s7, 768, %s2855_s22, %s1583_s19, %s1998_s30, %s1998_s30, %s1999_s12  }
 0x128 PF: > { %s1612_s13 = sand.u32 1, %s1973_s15   ;;  %p2933_p7 = scmp.ne.s32.totalorder %s2913_s28, 0 }
 0x129   : > { %p2934_p8 = scmp.ge.s32.totalorder %s1985_s18, 2  ;;  %s1613_s14 = scalar_lea.sflag [#allocation4], %s1612_s13 }
 0x12b   : > { %p1789_p9 = pnand %p2934_p8, %p2933_p7 }
 0x12d   : > { %p1790_p10 = pneg %p1789_p9 }
 0x12f   : > { %1968 = dma.done.wait (%p1790_p10), %s1613_s14, 768  }
 0x130   : > { %1970 = vsyncadd (%p1790_p10), %s1613_s14, 4294966528  ;;  %p18_p2 = scmp.ge.s32.totalorder %s2050_s21, 4   ;;  %s2935_s15 = smov %s1977_s16 }
 0x131   : > { %s2936_s16 = smov %s1981_s17  ;;  %s2937_s17 = smov %s2062_s24 }
 0x132   : > { %s2938_s18 = smov %s2050_s21  ;;  %20 = sbr.rel (!%p18_p2) target bundleno = 6 (0x6), region = 85 }
 0x137   :  { %1618 = vsyncpa [#allocation3], 1 }
 0x138   :  { %1620 = vsyncpa [#allocation3 + $0x1], 1 }
 0x139   :  { %1621 = vsyncpa [#allocation6], 1 }
 0x13a   :  { %1622 = vsyncpa [#allocation4], 1 }
 0x13b   :  { %1624 = vsyncpa [#allocation4 + $0x1], 1 }

// kernel: tpu_custom_call.1
= control target key start
LH: loop header
LB: loop body
LE: loop exit
PB: predicated region body
PF: predicated region fallthrough
CT: control target
= control target key end

     0   :  { %7 = vsyncpa [#allocation3], 0  ;;  %s781_s0 = inlined_call_operand.hbm [shape: f32[48,256], index: 0, kind: input, shape index: {}]   ;;  %s782_s1 = inlined_call_operand.hbm [shape: f32[48,256], index: 1, kind: input, shape index: {}]   ;;  %s783_s2 = inlined_call_operand.hbm [shape: f32[48,256], index: 2, kind: output, shape index: {}]  }
   0x1   :  { %9 = vsyncpa [#allocation3 + $0x1], 0 }
   0x2   :  { %10 = vsyncpa [#allocation6], 0 }
   0x3   :  { %12 = vsyncpa [#allocation6 + $0x1], 0 }
   0x4   :  { %13 = vsyncpa [#allocation4], 0 }
   0x5   :  { %15 = vsyncpa [#allocation4 + $0x1], 0  ;;  %s569_s9 = smov 0   ;;  %s571_s10 = smov 0  }
   0x6   :  { %s573_s11 = smov 0   ;;  %s575_s12 = smov 0  }
   0x7 LB: > { %s590_s13 = sadd.s32 4294967295, %s545_s12   ;;  %s342_s14 = sadd.s32 4294967294, %s545_s12   ;;  %s545_s12 = sphi %s575_s12, %s798_s12   ;;  %s541_s11 = sphi %s573_s11, %s797_s11   ;;  %s537_s10 = sphi %s571_s10, %s796_s10   ;;  %s533_s9 = sphi %s569_s9, %s795_s9  }
   0x8   : > { %s594_s15 = sadd.s32 1, %s545_s12   ;;  %s28_s16 = sadd.s32 1, %s541_s11 }
   0x9   : > { %s25_s17 = ssub.s32 %s545_s12, %s594_s15  ;;  %p35_p0 = scmp.ne.s32.totalorder %s541_s11, %s537_s10 }
   0xa   : > { %p26_p1 = scmp.eq.s32.totalorder %s25_s17, 0  ;;  %p36_p2 = scmp.eq.s32.totalorder %s545_s12, 0 }
   0xb   : > { %p41_p3 = scmp.ne.s32.totalorder %s537_s10, %s533_s9  ;;  %p42_p4 = scmp.eq.s32.totalorder %s590_s13, 0 }
   0xc   : > { %s606_s18 = scalar_select %p26_p1, %s541_s11, %s28_s16  }
   0xd   : > { %p37_p5 = por %p36_p2, %p35_p0  ;;  %p608_p6 = por %p42_p4, %p41_p3 }
   0xe   : > { %p91_p7 = scmp.eq.s32.totalorder %s590_s13, 1  ;;  %p97_p8 = scmp.eq.s32.totalorder %s342_s14, 1 }
   0xf   : > { %s786_s19 = scalar_select %p608_p6, 1, 0 }
  0x10   : > { %p383_p10 = scmp.lt.s32.totalorder %s545_s12, 2  ;;  %p615_p11 = por %p91_p7, %p35_p0 }
  0x11   : > { %p619_p12 = por %p97_p8, %p41_p3  ;;  %s624_s22 = sand.u32 1, %s541_s11  }
  0x12   : > { %s787_s20 = scalar_select %p615_p11, 1, 0 }
  0x13   : > { %s788_s21 = scalar_select %p619_p12, 1, 0 }
  0x14   : > { %s360_s23 = smul.u32 768, %s545_s12  ;;  %p635_p13 = pnand %p383_p10, %p37_p5 }
  0x15   : > { %s363_s24 = smul.u32 48, %s624_s22  ;;  %s118_s3 = scalar_lea.sflag [#allocation3], %s624_s22 }
  0x16   : > { %s633_s27 = scalar_lea.hbm %s781_s0, %s360_s23  ;;  %p423_p1 = pneg %p635_p13 }
  0x17   : > { %s121_s29 = scalar_lea.vmem [#allocation2], %s363_s24  ;;  %s421_s4 = scalar_lea.hbm %s633_s27, 768 }
  0x18   : > { %s129_s30 = sshll.u32 %s121_s29, 4  ;;  %p422_p0 = scmp.ne.s32.totalorder %s633_s27, %s421_s4  ;;  %s641_s30 = int_to_ptr.vmem [resolvable:$true] %s129_s30 }
  0x19   : > { %s426_s7 = scalar_lea.hbm %s781_s0, 1536  ;;  %p427_p4 = scmp.lt.s32.totalorder %s633_s27, %s781_s0 }
  0x1a   : > { %p424_p2 = pnand %p423_p1, %p422_p0  ;;  %p428_p5 = scmp.lt.s32.totalorder %s426_s7, %s421_s4 }
  0x1c   : > { %p425_p3 = pneg %p424_p2  ;;  %p429_p7 = por %p428_p5, %p427_p4 }
  0x1e   : > { %p430_p8 = pnand %p429_p7, %p425_p3 }
  0x20   : > { %433 = shalt.err (!%p430_p8)
}
  0x21   : > { %s434_s16 = scalar_lea.vmem %s641_s30, 768  ;;  %s547_s17 = smov [#allocation2]  }
  0x22   : > { %p435_p10 = scmp.ne.s32.totalorder %s641_s30, %s434_s16  ;;  %s439_s25 = sshll.u32 %s547_s17, 4  ;;  %s440_s25 = int_to_ptr.vmem [resolvable:$false] %s439_s25 }
  0x23   : > { %s441_s26 = scalar_lea.vmem %s440_s25, 1536  ;;  %p442_p9 = scmp.lt.s32.totalorder %s641_s30, %s440_s25 }
  0x24   : > { %p437_p0 = pnand %p435_p10, %p423_p1  ;;  %p443_p12 = scmp.lt.s32.totalorder %s441_s26, %s434_s16 }
  0x26   : > { %p438_p2 = pneg %p437_p0  ;;  %p444_p11 = por %p443_p12, %p442_p9 }
  0x28   : > { %p445_p4 = pnand %p444_p11, %p438_p2 }
  0x2a   : > { %448 = shalt.err (!%p445_p4)
}
  0x2b   : > { %s548_s29 = smov 256   ;;  %s549_s4 = smov 16  }
  0x2c   : > { %375 = dma.hbm_to_vmem [thread:$0]  (!%p635_p13), %s633_s27, 768, %s641_s30, %s118_s3, %s548_s29, %s548_s29, %s549_s4  }
  0x2d   : > { %p349_p9 = scmp.ge.s32.totalorder %s545_s12, 1  ;;  %p159_p11 = scmp.lt.s32.totalorder %s545_s12, 3 }
  0x2e   : > { %s684_s8 = scalar_lea.hbm %s782_s1, %s360_s23  ;;  %s143_s14 = scalar_lea.vmem [#allocation5], %s363_s24 }
  0x2f   : > { %p675_p12 = pnand %p349_p9, %p159_p11  ;;  %s151_s16 = sshll.u32 %s143_s14, 4  ;;  %s688_s16 = int_to_ptr.vmem [resolvable:$true] %s151_s16 }
  0x30   : > { %s140_s27 = scalar_lea.sflag [#allocation6], %s624_s22  ;;  %s449_s30 = scalar_lea.hbm %s684_s8, 768 }
  0x31   : > { %p450_p3 = scmp.ne.s32.totalorder %s684_s8, %s449_s30  ;;  %s454_s23 = scalar_lea.hbm %s782_s1, 1536 }
  0x32   : > { %p455_p8 = scmp.lt.s32.totalorder %s684_s8, %s782_s1  ;;  %p456_p10 = scmp.lt.s32.totalorder %s454_s23, %s449_s30 }
  0x33   : > { %p452_p5 = pnand %p450_p3, %p423_p1 }
  0x34   : > { %p457_p0 = por %p456_p10, %p455_p8 }
  0x35   : > { %p453_p7 = pneg %p452_p5 }
  0x37   : > { %p458_p2 = pnand %p457_p0, %p453_p7 }
  0x39   : > { %461 = shalt.err (!%p458_p2)
}
  0x3a   : > { %s462_s22 = scalar_lea.vmem %s688_s16, 768  ;;  %s550_s24 = smov [#allocation5]  }
  0x3b   : > { %p463_p4 = scmp.ne.s32.totalorder %s688_s16, %s462_s22  ;;  %s467_s6 = sshll.u32 %s550_s24, 4  ;;  %s468_s6 = int_to_ptr.vmem [resolvable:$false] %s467_s6 }
  0x3c   : > { %s469_s7 = scalar_lea.vmem %s468_s6, 1536  ;;  %p470_p3 = scmp.lt.s32.totalorder %s688_s16, %s468_s6 }
  0x3d   : > { %p465_p9 = pnand %p463_p4, %p423_p1  ;;  %p471_p5 = scmp.lt.s32.totalorder %s469_s7, %s462_s22 }
  0x3f   : > { %p466_p11 = pneg %p465_p9  ;;  %p472_p6 = por %p471_p5, %p470_p3 }
  0x41   : > { %p473_p8 = pnand %p472_p6, %p466_p11 }
  0x43   : > { %476 = shalt.err (!%p473_p8)
}
  0x44   : > { %378 = dma.hbm_to_vmem [thread:$0]  (!%p635_p13), %s684_s8, 768, %s688_s16, %s140_s27, %s548_s29, %s548_s29, %s549_s4  }
  0x45   : > { %163 = sbr.rel (%p675_p12) target bundleno = 103 (0x67), region = 28  ;;  %s719_s14 = sand.u32 (!%p675_p12), 1, %s537_s10  }
  0x46   : > { %s365_s30 = smul.u32 (!%p675_p12), 48, %s719_s14  ;;  %s166_s3 = scalar_lea.sflag (!%p675_p12), [#allocation3], %s719_s14 }
  0x47   : > { %p791_p6 = scmp.ne.s32.totalorder (!%p675_p12), %s786_s19, 0 }
  0x48   : > { %s169_s17 = scalar_lea.vmem (!%p675_p12), [#allocation2], %s365_s30 }
  0x4a   : > { %520 = dma.done.wait (%p791_p6), %s166_s3, 768  }
  0x4b   : > { %522 = vsyncadd (%p791_p6), %s166_s3, 4294966528  ;;  %s175_s28 = scalar_lea.sflag [#allocation6], %s719_s14  ;;  %s178_s29 = scalar_lea.vmem [#allocation5], %s365_s30 }
  0x4c   : > { %524 = dma.done.wait (%p791_p6), %s175_s28, 768  }
  0x4d   : > { %526 = vsyncadd (%p791_p6), %s175_s28, 4294966528  ;;  %v207_v0 = vld [vmem:[%s169_s17] sm:$0xff]  ;;  %s203_s4 = scalar_lea.vmem [#allocation7], %s365_s30  ;;  %v208_v2 = vld [vmem:[%s169_s17 + $0x8] sm:$0xff]  ;;  %s362_s8 = smul.u32 768, %s590_s13 }
  0x4e   : > { %v213_v1 = vld [vmem:[%s178_s29] sm:$0xff]  ;;  %s246_s5 = sshll.u32 %s203_s4, 4  ;;  %v214_v4 = vld [vmem:[%s178_s29 + $0x8] sm:$0xff]  ;;  %v209_v5 = vld [vmem:[%s169_s17 + $0x10] sm:$0xff]  ;;  %s232_s27 = scalar_lea.sflag [#allocation4], %s719_s14  ;;  %s733_s5 = int_to_ptr.vmem [resolvable:$true] %s246_s5 }
  0x4f   : > { %v219_v3 = vadd.f32 %v213_v1, %v207_v0  ;;  %v215_v6 = vld [vmem:[%s178_s29 + $0x10] sm:$0xff]  ;;  %v220_v7 = vadd.f32 %v214_v4, %v208_v2  ;;  %v210_v9 = vld [vmem:[%s169_s17 + $0x18] sm:$0xff]  ;;  %v211_v11 = vld [vmem:[%s169_s17 + $0x20] sm:$0xff]  ;;  %s738_s16 = scalar_lea.hbm %s783_s2, %s362_s8  ;;  %s477_s23 = scalar_lea.vmem %s733_s5, 768 }
  0x50   : > { %v221_v8 = vadd.f32 %v215_v6, %v209_v5  ;;  %v216_v10 = vld [vmem:[%s178_s29 + $0x18] sm:$0xff]  ;;  %v217_v13 = vld [vmem:[%s178_s29 + $0x20] sm:$0xff]  ;;  %v212_v14 = vld [vmem:[%s169_s17 + $0x28] sm:$0xff]  ;;  %p478_p13 = scmp.ne.s32.totalorder %s733_s5, %s477_s23  ;;  %p792_p1 = scmp.ne.s32.totalorder %s787_s20, 0 }
  0x51   : > { %225 = vst [vmem:[%s203_s4] sm:$0xff] %v219_v3  ;;  %v222_v12 = vadd.f32 %v216_v10, %v210_v9  ;;  %v218_v15 = vld [vmem:[%s178_s29 + $0x28] sm:$0xff]  ;;  %226 = vst [vmem:[%s203_s4 + $0x8] sm:$0xff] %v220_v7  ;;  %v223_v16 = vadd.f32 %v217_v13, %v211_v11  ;;  %s551_s25 = smov [#allocation7]  }
  0x52   : > { %227 = vst [vmem:[%s203_s4 + $0x10] sm:$0xff] %v221_v8  ;;  %v224_v17 = vadd.f32 %v218_v15, %v212_v14  ;;  %p479_p12 = pnand %p478_p13, %p792_p1  ;;  %s481_s26 = sshll.u32 %s551_s25, 4  ;;  %s482_s26 = int_to_ptr.vmem [resolvable:$false] %s481_s26 }
  0x53   : > { %228 = vst [vmem:[%s203_s4 + $0x18] sm:$0xff] %v222_v12  ;;  %229 = vst [vmem:[%s203_s4 + $0x20] sm:$0xff] %v223_v16  ;;  %s483_s22 = scalar_lea.vmem %s482_s26, 1536  ;;  %p484_p10 = scmp.lt.s32.totalorder %s733_s5, %s482_s26 }
  0x54   : > { %230 = vst [vmem:[%s203_s4 + $0x28] sm:$0xff] %v224_v17  ;;  %p480_p7 = pneg %p479_p12  ;;  %p485_p0 = scmp.lt.s32.totalorder %s483_s22, %s477_s23 }
  0x56   : > { %p486_p2 = por %p485_p0, %p484_p10 }
  0x58   : > { %p487_p4 = pnand %p486_p2, %p480_p7 }
  0x5a   : > { %490 = shalt.err (!%p487_p4)
}
  0x5b   : > { %s491_s24 = scalar_lea.hbm %s738_s16, 768  ;;  %s495_s30 = scalar_lea.hbm %s783_s2, 1536 }
  0x5c   : > { %p492_p9 = scmp.ne.s32.totalorder %s738_s16, %s491_s24  ;;  %p496_p5 = scmp.lt.s32.totalorder %s738_s16, %s783_s2 }
  0x5d   : > { %p497_p8 = scmp.lt.s32.totalorder %s495_s30, %s491_s24 }
  0x5e   : > { %p493_p11 = pnand %p492_p9, %p792_p1 }
  0x5f   : > { %p498_p6 = por %p497_p8, %p496_p5 }
  0x60   : > { %p494_p3 = pneg %p493_p11 }
  0x62   : > { %p499_p13 = pnand %p498_p6, %p494_p3 }
  0x64   : > { %502 = shalt.err (!%p499_p13)
}
  0x65   : > { %s552_s28 = smov 256   ;;  %s553_s29 = smov 16  }
  0x66   : > { %370 = dma.vmem_to_hbm [thread:$0]  (%p792_p1), %s733_s5, 768, %s738_s16, %s232_s27, %s552_s28, %s552_s28, %s553_s29  }
  0x67 PF: > { %s261_s4 = sand.u32 1, %s533_s9   ;;  %p793_p12 = scmp.ne.s32.totalorder %s788_s21, 0 }
  0x68   : > { %p794_p7 = scmp.ge.s32.totalorder %s545_s12, 2  ;;  %s262_s8 = scalar_lea.sflag [#allocation4], %s261_s4 }
  0x6a   : > { %p380_p10 = pnand %p794_p7, %p793_p12 }
  0x6c   : > { %p381_p0 = pneg %p380_p10 }
  0x6e   : > { %528 = dma.done.wait (%p381_p0), %s262_s8, 768  }
  0x6f   : > { %530 = vsyncadd (%p381_p0), %s262_s8, 4294966528  ;;  %p18_p2 = scmp.ge.s32.totalorder %s594_s15, 4   ;;  %s795_s9 = smov %s537_s10 }
  0x70   : > { %s796_s10 = smov %s541_s11  ;;  %s797_s11 = smov %s606_s18 }
  0x71   : > { %s798_s12 = smov %s594_s15  ;;  %20 = sbr.rel (!%p18_p2) target bundleno = 7 (0x7), region = 86 }
  0x76   :  { %267 = vsyncpa [#allocation3], 1 }
  0x77   :  { %269 = vsyncpa [#allocation3 + $0x1], 1 }
  0x78   :  { %270 = vsyncpa [#allocation6], 1 }
  0x79   :  { %272 = vsyncpa [#allocation6 + $0x1], 1 }
  0x7a   :  { %273 = vsyncpa [#allocation4], 1 }
  0x7b   :  { %275 = vsyncpa [#allocation4 + $0x1], 1 }

</bundles_post_ra>
